<compile_context>
chip_gen: v7x
topology: tpu7x:2x2x1
jax: 0.10.0
libtpu: 0.0.40
codegen_flags: <defaults>
</compile_context>

<pallas_src>
import jax
import jax.numpy as jnp
from jax.experimental import pallas as pl
from jax.experimental.pallas import tpu as pltpu  # noqa: F401  (TPU target)

# ---------------- model config (small, synthetic) ----------------
VOCAB = 256
HIDDEN = 32
N_LAYERS = 2
N_HEADS = 4
HEAD_DIM = HIDDEN // N_HEADS
INTER = 64
EPS = 1e-5
NEG_INF = -1e9


# ---------------- fused kernel (single invocation, whole batch) ------------
def _fused_llama_kernel(h_ref, mask_ref, cos_ref, sin_ref,
                        attn_norm_ref, w_qkv_ref, wo_ref,
                        mlp_norm_ref, w_gu_ref, wd_ref,
                        final_norm_ref, out_ref):
    BS, D = h_ref.shape          # B*S rows (batch folded into sublanes), D=32
    Dh = HEAD_DIM
    scale = 1.0 / (float(HEAD_DIM) ** 0.5)

    h = h_ref[...]               # [BS, D]  f32 activations
    add_mask = mask_ref[...]     # [BS, BS] additive causal+pad mask (block-diag over batch)
    cos = cos_ref[...]           # [BS, D]  RoPE cos (per flattened row, tiled over heads)
    sin = sin_ref[...]           # [BS, D]

    # Per-head 0/1 lane masks, built ONCE (hoisted out of the layer loop).
    lane = jax.lax.broadcasted_iota(jnp.int32, (1, D), 1)
    head_masks = [((lane >= hh * Dh) & (lane < (hh + 1) * Dh)).astype(jnp.float32)
                  for hh in range(N_HEADS)]

    def rmsnorm(x, w):           # stats / elementwise kept in f32 (v5e-safe)
        var = jnp.mean(x * x, axis=-1, keepdims=True)
        return x * jax.lax.rsqrt(var + EPS) * w

    for l in range(N_LAYERS):
        # ---------------- attention block ----------------
        xn_bf = rmsnorm(h, attn_norm_ref[l]).astype(jnp.bfloat16)   # cast once
        # One lane-dense bf16 matmul; columns = [q | q@rot | k | k@rot | v].
        qkv = jnp.dot(xn_bf, w_qkv_ref[l], preferred_element_type=jnp.float32)
        q = qkv[:, 0 * D:1 * D] * cos + qkv[:, 1 * D:2 * D] * sin   # RoPE (rot folded)
        k = qkv[:, 2 * D:3 * D] * cos + qkv[:, 3 * D:4 * D] * sin
        v = qkv[:, 4 * D:5 * D]

        q_bf = (q * scale).astype(jnp.bfloat16)   # fold 1/sqrt(Dh) into q once per layer
        attn = jnp.zeros((BS, D), jnp.float32)
        for hh in range(N_HEADS):
            m_h = head_masks[hh]
            # Contraction only over head-hh lanes (exact, k masked to zero elsewhere);
            # head output lands in its own lanes via the masked v.
            kh_bf = (k * m_h).astype(jnp.bfloat16)
            vh_bf = (v * m_h).astype(jnp.bfloat16)
            s = jax.lax.dot_general(q_bf, kh_bf, (((1,), (1,)), ((), ())),
                                    preferred_element_type=jnp.float32)
            s = s + add_mask                                  # [BS, BS]
            mx = jnp.max(s, axis=-1, keepdims=True)
            p = jnp.exp(s - mx)
            p = p * pl.reciprocal(jnp.sum(p, axis=-1, keepdims=True), approx=True)
            attn = attn + jnp.dot(p.astype(jnp.bfloat16), vh_bf,
                                  preferred_element_type=jnp.float32)
        h = h + jnp.dot(attn.astype(jnp.bfloat16), wo_ref[l],
                        preferred_element_type=jnp.float32)   # O-proj + residual

        # ---------------- SwiGLU MLP block ----------------
        xn_bf = rmsnorm(h, mlp_norm_ref[l]).astype(jnp.bfloat16)
        gu = jnp.dot(xn_bf, w_gu_ref[l], preferred_element_type=jnp.float32)
        g = gu[:, :INTER]
        u = gu[:, INTER:]
        h = h + jnp.dot(((g * jax.nn.sigmoid(g)) * u).astype(jnp.bfloat16),
                        wd_ref[l], preferred_element_type=jnp.float32)

    # Final RMSNorm (== hidden_states[-1]).  Computing all BS rows here is
    # negligible at [16,32]; last-token select + HIDDEN->1 head run in the
    # wrapper so the kernel output stays lane-dense.
    out_ref[...] = rmsnorm(h, final_norm_ref[...])            # [BS, D] f32


# ---------------- parameters (deterministic, synthetic) ----------------
def rope_tables(S, Dh):
    inv_freq = 1.0 / (10000.0 ** (jnp.arange(0, Dh, 2, dtype=jnp.float32) / Dh))
    t = jnp.arange(S, dtype=jnp.float32)
    freqs = jnp.outer(t, inv_freq)                   # [S, Dh/2]
    emb = jnp.concatenate([freqs, freqs], axis=-1)   # [S, Dh]  (HF layout)
    return jnp.cos(emb), jnp.sin(emb)


def rotate_half_matrix():
    """[HIDDEN, HIDDEN] block-diagonal +-1 matrix with x @ R == rotate_half(x) per head."""
    Dh = HEAD_DIM
    half = Dh // 2
    i = jnp.arange(Dh)[:, None]
    j = jnp.arange(Dh)[None, :]
    r = jnp.where((j < half) & (i == j + half), -1.0,
                  jnp.where((j >= half) & (i == j - half), 1.0, 0.0))
    return jnp.kron(jnp.eye(N_HEADS, dtype=jnp.float32), r.astype(jnp.float32))


def init_params(key):
    keys = jax.random.split(key, 2 + N_LAYERS)

    def norm_init(k, shape, scale=0.02):
        return (scale * jax.random.normal(k, shape)).astype(jnp.float32)

    rot = rotate_half_matrix()

    w_qkv, w_o, w_gu, w_d = [], [], [], []
    for i in range(N_LAYERS):
        lk = jax.random.split(keys[2 + i], 7)
        wq = norm_init(lk[0], (HIDDEN, HIDDEN))
        wk = norm_init(lk[1], (HIDDEN, HIDDEN))
        wv = norm_init(lk[2], (HIDDEN, HIDDEN))
        wo = norm_init(lk[3], (HIDDEN, HIDDEN))
        wg = norm_init(lk[4], (HIDDEN, INTER))
        wu = norm_init(lk[5], (HIDDEN, INTER))
        wd = norm_init(lk[6], (INTER, HIDDEN))
        # Fold rotate_half into Q/K (exact: rot is a signed column permutation)
        # and concatenate into lane-dense fused projection weights.
        w_qkv.append(jnp.concatenate([wq, wq @ rot, wk, wk @ rot, wv], axis=1))
        w_o.append(wo)
        w_gu.append(jnp.concatenate([wg, wu], axis=1))
        w_d.append(wd)

    return {
        "embed": norm_init(keys[0], (VOCAB, HIDDEN)),
        "attn_norm": jnp.ones((N_LAYERS, 1, HIDDEN), jnp.float32),
        "mlp_norm": jnp.ones((N_LAYERS, 1, HIDDEN), jnp.float32),
        "final_norm": jnp.ones((1, HIDDEN), jnp.float32),
        # matmul weights stored bf16 (MXU-native operands, f32 accumulation)
        "w_qkv": jnp.stack(w_qkv).astype(jnp.bfloat16),   # [L, 32, 160]
        "wo": jnp.stack(w_o).astype(jnp.bfloat16),        # [L, 32, 32]
        "w_gu": jnp.stack(w_gu).astype(jnp.bfloat16),     # [L, 32, 128]
        "wd": jnp.stack(w_d).astype(jnp.bfloat16),        # [L, 64, 32]
        # regression head applied in the wrapper (lane-dense kernel output)
        "head_w": norm_init(keys[1], (HIDDEN, 1)),
        "head_b": jnp.zeros((1, 1), jnp.float32),
    }


# ---------------- forward (mirrors LLaMAForRegression.forward) -------------
def llama_regression_forward(params, input_ids, attention_mask):
    B, S = input_ids.shape
    D = HIDDEN
    BS = B * S

    # TODO(synk): embedding gather kept in JAX glue (tiny row gather); could be
    # a manual-DMA gather kernel for large vocab/seq.
    h = jnp.take(params["embed"], input_ids.reshape(-1), axis=0)     # [BS, D] f32

    # RoPE tables tiled across heads, then across batch (per flattened row).
    cos, sin = rope_tables(S, HEAD_DIM)                              # [S, Dh]
    cos_bs = jnp.tile(jnp.tile(cos, (1, N_HEADS)), (B, 1))           # [BS, D]
    sin_bs = jnp.tile(jnp.tile(sin, (1, N_HEADS)), (B, 1))

    # Block-diagonal (over batch) causal + padding additive mask, [BS, BS] f32.
    bidx = jnp.arange(BS) // S
    pos = jnp.arange(BS) % S
    key_keep = attention_mask.reshape(-1) > 0
    allow = ((bidx[:, None] == bidx[None, :]) &
             (pos[None, :] <= pos[:, None]) &
             key_keep[None, :])
    add_mask = jnp.where(allow, 0.0, NEG_INF).astype(jnp.float32)

    # Single kernel invocation (no grid): all weights + activations (<100 KB)
    # resident in VMEM; batch lives on the sublane axis.
    hs = pl.pallas_call(
        _fused_llama_kernel,
        out_shape=jax.ShapeDtypeStruct((BS, D), jnp.float32),
    )(h, add_mask, cos_bs, sin_bs,
      params["attn_norm"], params["w_qkv"], params["wo"],
      params["mlp_norm"], params["w_gu"], params["wd"],
      params["final_norm"])

    # hidden_states[-1][:, -1, :] -> regression head (wrapper-side, free for XLA)
    last = hs.reshape(B, S, D)[:, -1, :]                             # [B, D]
    return last @ params["head_w"] + params["head_b"]                # [B, 1]


if __name__ == "__main__":
    key = jax.random.PRNGKey(0)
    pkey, ikey = jax.random.split(key)

    params = init_params(pkey)

    B, S = 2, 8
    input_ids = jax.random.randint(ikey, (B, S), 0, VOCAB, dtype=jnp.int32)
    attention_mask = jnp.ones((B, S), dtype=jnp.int32)
    # give the first example one left-pad token to exercise the mask path
    attention_mask = attention_mask.at[0, 0].set(0)

    fwd = jax.jit(llama_regression_forward)
    pred = jax.block_until_ready(fwd(params, input_ids, attention_mask))

    assert pred.shape == (B, 1) and pred.dtype == jnp.float32
    assert bool(jnp.all(jnp.isfinite(pred)))
    print("KERNEL_OK")
</pallas_src>

<mosaic_0001>
module attributes {stable_mosaic.version = 11 : i64} {
  func.func @_fused_llama_kernel(%arg0: memref<16x32xf32, #tpu.memory_space<vmem>>, %arg1: memref<16x16xf32, #tpu.memory_space<vmem>>, %arg2: memref<16x32xf32, #tpu.memory_space<vmem>>, %arg3: memref<16x32xf32, #tpu.memory_space<vmem>>, %arg4: memref<2x1x32xf32, #tpu.memory_space<vmem>>, %arg5: memref<2x32x160xbf16, #tpu.memory_space<vmem>>, %arg6: memref<2x32x32xbf16, #tpu.memory_space<vmem>>, %arg7: memref<2x1x32xf32, #tpu.memory_space<vmem>>, %arg8: memref<2x32x128xbf16, #tpu.memory_space<vmem>>, %arg9: memref<2x64x32xbf16, #tpu.memory_space<vmem>>, %arg10: memref<1x32xf32, #tpu.memory_space<vmem>>, %arg11: memref<16x32xf32, #tpu.memory_space<vmem>>) attributes {dimension_semantics = [], scalar_prefetch = 0 : i64, scratch_operands = 0 : i64, tpu.core_type = #tpu.core_type<tc>} {
    %c0 = arith.constant 0 : index
    %c0_0 = arith.constant 0 : index
    %0 = vector.load %arg0[%c0, %c0_0] : memref<16x32xf32, #tpu.memory_space<vmem>>, vector<16x32xf32>
    %c0_1 = arith.constant 0 : index
    %c0_2 = arith.constant 0 : index
    %1 = vector.load %arg1[%c0_1, %c0_2] : memref<16x16xf32, #tpu.memory_space<vmem>>, vector<16x16xf32>
    %c0_3 = arith.constant 0 : index
    %c0_4 = arith.constant 0 : index
    %2 = vector.load %arg2[%c0_3, %c0_4] : memref<16x32xf32, #tpu.memory_space<vmem>>, vector<16x32xf32>
    %c0_5 = arith.constant 0 : index
    %c0_6 = arith.constant 0 : index
    %3 = vector.load %arg3[%c0_5, %c0_6] : memref<16x32xf32, #tpu.memory_space<vmem>>, vector<16x32xf32>
    %4 = tpu.iota {dimensions = array<i32: 1>} : vector<1x32xi32>
    %c0_i32 = arith.constant 0 : i32
    %5 = vector.broadcast %c0_i32 : i32 to vector<1x32xi32>
    %6 = arith.cmpi sge, %4, %5 : vector<1x32xi32>
    %c8_i32 = arith.constant 8 : i32
    %7 = vector.broadcast %c8_i32 : i32 to vector<1x32xi32>
    %8 = arith.cmpi slt, %4, %7 : vector<1x32xi32>
    %9 = arith.andi %6, %8 : vector<1x32xi1>
    %10 = arith.extui %9 : vector<1x32xi1> to vector<1x32xi32>
    %11 = arith.sitofp %10 : vector<1x32xi32> to vector<1x32xf32>
    %c8_i32_7 = arith.constant 8 : i32
    %12 = vector.broadcast %c8_i32_7 : i32 to vector<1x32xi32>
    %13 = arith.cmpi sge, %4, %12 : vector<1x32xi32>
    %c16_i32 = arith.constant 16 : i32
    %14 = vector.broadcast %c16_i32 : i32 to vector<1x32xi32>
    %15 = arith.cmpi slt, %4, %14 : vector<1x32xi32>
    %16 = arith.andi %13, %15 : vector<1x32xi1>
    %17 = arith.extui %16 : vector<1x32xi1> to vector<1x32xi32>
    %18 = arith.sitofp %17 : vector<1x32xi32> to vector<1x32xf32>
    %c16_i32_8 = arith.constant 16 : i32
    %19 = vector.broadcast %c16_i32_8 : i32 to vector<1x32xi32>
    %20 = arith.cmpi sge, %4, %19 : vector<1x32xi32>
    %c24_i32 = arith.constant 24 : i32
    %21 = vector.broadcast %c24_i32 : i32 to vector<1x32xi32>
    %22 = arith.cmpi slt, %4, %21 : vector<1x32xi32>
    %23 = arith.andi %20, %22 : vector<1x32xi1>
    %24 = arith.extui %23 : vector<1x32xi1> to vector<1x32xi32>
    %25 = arith.sitofp %24 : vector<1x32xi32> to vector<1x32xf32>
    %c24_i32_9 = arith.constant 24 : i32
    %26 = vector.broadcast %c24_i32_9 : i32 to vector<1x32xi32>
    %27 = arith.cmpi sge, %4, %26 : vector<1x32xi32>
    %c32_i32 = arith.constant 32 : i32
    %28 = vector.broadcast %c32_i32 : i32 to vector<1x32xi32>
    %29 = arith.cmpi slt, %4, %28 : vector<1x32xi32>
    %30 = arith.andi %27, %29 : vector<1x32xi1>
    %31 = arith.extui %30 : vector<1x32xi1> to vector<1x32xi32>
    %32 = arith.sitofp %31 : vector<1x32xi32> to vector<1x32xf32>
    %c0_10 = arith.constant 0 : index
    %c0_11 = arith.constant 0 : index
    %c0_12 = arith.constant 0 : index
    %33 = vector.load %arg4[%c0_10, %c0_11, %c0_12] : memref<2x1x32xf32, #tpu.memory_space<vmem>>, vector<1x1x32xf32>
    %34 = vector.shape_cast %33 : vector<1x1x32xf32> to vector<1x32xf32>
    %35 = arith.mulf %0, %0 : vector<16x32xf32>
    %cst = arith.constant dense<0.000000e+00> : vector<16xf32>
    %36 = vector.multi_reduction <add>, %35, %cst [1] : vector<16x32xf32> to vector<16xf32>
    %37 = vector.shape_cast %36 : vector<16xf32> to vector<16x1xf32>
    %cst_13 = arith.constant 3.200000e+01 : f32
    %38 = vector.broadcast %cst_13 : f32 to vector<16x1xf32>
    %39 = arith.divf %37, %38 : vector<16x1xf32>
    %cst_14 = arith.constant 9.99999974E-6 : f32
    %40 = vector.broadcast %cst_14 : f32 to vector<16x1xf32>
    %41 = arith.addf %39, %40 : vector<16x1xf32>
    %42 = math.rsqrt %41 : vector<16x1xf32>
    %43 = vector.broadcast %42 : vector<16x1xf32> to vector<16x32xf32>
    %44 = arith.mulf %0, %43 : vector<16x32xf32>
    %45 = vector.broadcast %34 : vector<1x32xf32> to vector<16x32xf32>
    %46 = arith.mulf %44, %45 : vector<16x32xf32>
    %47 = arith.truncf %46 : vector<16x32xf32> to vector<16x32xbf16>
    %c0_15 = arith.constant 0 : index
    %c0_16 = arith.constant 0 : index
    %c0_17 = arith.constant 0 : index
    %48 = vector.load %arg5[%c0_15, %c0_16, %c0_17] : memref<2x32x160xbf16, #tpu.memory_space<vmem>>, vector<1x32x160xbf16>
    %49 = vector.shape_cast %48 : vector<1x32x160xbf16> to vector<32x160xbf16>
    %cst_18 = arith.constant dense<0.000000e+00> : vector<16x160xf32>
    %50 = tpu.matmul %47, %49, %cst_18 {dimension_numbers = #tpu.dot_dimension_numbers<[1], [0], [0], [1], [0, 0, 1, 1], [], []>} : vector<16x32xbf16>, vector<32x160xbf16>, vector<16x160xf32> -> vector<16x160xf32>
    %51 = vector.extract_strided_slice %50 {offsets = [0, 0], sizes = [16, 32], strides = [1, 1]} : vector<16x160xf32> to vector<16x32xf32>
    %52 = arith.mulf %51, %2 : vector<16x32xf32>
    %53 = vector.extract_strided_slice %50 {offsets = [0, 32], sizes = [16, 32], strides = [1, 1]} : vector<16x160xf32> to vector<16x32xf32>
    %54 = arith.mulf %53, %3 : vector<16x32xf32>
    %55 = arith.addf %52, %54 : vector<16x32xf32>
    %56 = vector.extract_strided_slice %50 {offsets = [0, 64], sizes = [16, 32], strides = [1, 1]} : vector<16x160xf32> to vector<16x32xf32>
    %57 = arith.mulf %56, %2 : vector<16x32xf32>
    %58 = vector.extract_strided_slice %50 {offsets = [0, 96], sizes = [16, 32], strides = [1, 1]} : vector<16x160xf32> to vector<16x32xf32>
    %59 = arith.mulf %58, %3 : vector<16x32xf32>
    %60 = arith.addf %57, %59 : vector<16x32xf32>
    %61 = vector.extract_strided_slice %50 {offsets = [0, 128], sizes = [16, 32], strides = [1, 1]} : vector<16x160xf32> to vector<16x32xf32>
    %cst_19 = arith.constant 0.353553385 : f32
    %62 = vector.broadcast %cst_19 : f32 to vector<16x32xf32>
    %63 = arith.mulf %55, %62 : vector<16x32xf32>
    %64 = arith.truncf %63 : vector<16x32xf32> to vector<16x32xbf16>
    %cst_20 = arith.constant 0.000000e+00 : f32
    %65 = vector.broadcast %cst_20 : f32 to vector<16x32xf32>
    %66 = vector.broadcast %11 : vector<1x32xf32> to vector<16x32xf32>
    %67 = arith.mulf %60, %66 : vector<16x32xf32>
    %68 = arith.truncf %67 : vector<16x32xf32> to vector<16x32xbf16>
    %69 = vector.broadcast %11 : vector<1x32xf32> to vector<16x32xf32>
    %70 = arith.mulf %61, %69 : vector<16x32xf32>
    %71 = arith.truncf %70 : vector<16x32xf32> to vector<16x32xbf16>
    %cst_21 = arith.constant dense<0.000000e+00> : vector<16x16xf32>
    %72 = tpu.matmul %64, %68, %cst_21 {dimension_numbers = #tpu.dot_dimension_numbers<[1], [1], [0], [0], [0, 0, 1, 0], [], []>} : vector<16x32xbf16>, vector<16x32xbf16>, vector<16x16xf32> -> vector<16x16xf32>
    %73 = arith.addf %72, %1 : vector<16x16xf32>
    %cst_22 = arith.constant dense<0xFF800000> : vector<16xf32>
    %74 = vector.multi_reduction <maximumf>, %73, %cst_22 [1] : vector<16x16xf32> to vector<16xf32>
    %75 = vector.shape_cast %74 : vector<16xf32> to vector<16x1xf32>
    %76 = vector.broadcast %75 : vector<16x1xf32> to vector<16x16xf32>
    %77 = arith.subf %73, %76 : vector<16x16xf32>
    %78 = math.exp %77 : vector<16x16xf32>
    %cst_23 = arith.constant dense<0.000000e+00> : vector<16xf32>
    %79 = vector.multi_reduction <add>, %78, %cst_23 [1] : vector<16x16xf32> to vector<16xf32>
    %80 = vector.shape_cast %79 : vector<16xf32> to vector<16x1xf32>
    %81 = tpu.reciprocal %80 {approx = true} : vector<16x1xf32> -> vector<16x1xf32>
    %82 = vector.broadcast %81 : vector<16x1xf32> to vector<16x16xf32>
    %83 = arith.mulf %78, %82 : vector<16x16xf32>
    %84 = arith.truncf %83 : vector<16x16xf32> to vector<16x16xbf16>
    %cst_24 = arith.constant dense<0.000000e+00> : vector<16x32xf32>
    %85 = tpu.matmul %84, %71, %cst_24 {dimension_numbers = #tpu.dot_dimension_numbers<[1], [0], [0], [1], [0, 0, 1, 1], [], []>} : vector<16x16xbf16>, vector<16x32xbf16>, vector<16x32xf32> -> vector<16x32xf32>
    %86 = arith.addf %65, %85 : vector<16x32xf32>
    %87 = vector.broadcast %18 : vector<1x32xf32> to vector<16x32xf32>
    %88 = arith.mulf %60, %87 : vector<16x32xf32>
    %89 = arith.truncf %88 : vector<16x32xf32> to vector<16x32xbf16>
    %90 = vector.broadcast %18 : vector<1x32xf32> to vector<16x32xf32>
    %91 = arith.mulf %61, %90 : vector<16x32xf32>
    %92 = arith.truncf %91 : vector<16x32xf32> to vector<16x32xbf16>
    %cst_25 = arith.constant dense<0.000000e+00> : vector<16x16xf32>
    %93 = tpu.matmul %64, %89, %cst_25 {dimension_numbers = #tpu.dot_dimension_numbers<[1], [1], [0], [0], [0, 0, 1, 0], [], []>} : vector<16x32xbf16>, vector<16x32xbf16>, vector<16x16xf32> -> vector<16x16xf32>
    %94 = arith.addf %93, %1 : vector<16x16xf32>
    %cst_26 = arith.constant dense<0xFF800000> : vector<16xf32>
    %95 = vector.multi_reduction <maximumf>, %94, %cst_26 [1] : vector<16x16xf32> to vector<16xf32>
    %96 = vector.shape_cast %95 : vector<16xf32> to vector<16x1xf32>
    %97 = vector.broadcast %96 : vector<16x1xf32> to vector<16x16xf32>
    %98 = arith.subf %94, %97 : vector<16x16xf32>
    %99 = math.exp %98 : vector<16x16xf32>
    %cst_27 = arith.constant dense<0.000000e+00> : vector<16xf32>
    %100 = vector.multi_reduction <add>, %99, %cst_27 [1] : vector<16x16xf32> to vector<16xf32>
    %101 = vector.shape_cast %100 : vector<16xf32> to vector<16x1xf32>
    %102 = tpu.reciprocal %101 {approx = true} : vector<16x1xf32> -> vector<16x1xf32>
    %103 = vector.broadcast %102 : vector<16x1xf32> to vector<16x16xf32>
    %104 = arith.mulf %99, %103 : vector<16x16xf32>
    %105 = arith.truncf %104 : vector<16x16xf32> to vector<16x16xbf16>
    %cst_28 = arith.constant dense<0.000000e+00> : vector<16x32xf32>
    %106 = tpu.matmul %105, %92, %cst_28 {dimension_numbers = #tpu.dot_dimension_numbers<[1], [0], [0], [1], [0, 0, 1, 1], [], []>} : vector<16x16xbf16>, vector<16x32xbf16>, vector<16x32xf32> -> vector<16x32xf32>
    %107 = arith.addf %86, %106 : vector<16x32xf32>
    %108 = vector.broadcast %25 : vector<1x32xf32> to vector<16x32xf32>
    %109 = arith.mulf %60, %108 : vector<16x32xf32>
    %110 = arith.truncf %109 : vector<16x32xf32> to vector<16x32xbf16>
    %111 = vector.broadcast %25 : vector<1x32xf32> to vector<16x32xf32>
    %112 = arith.mulf %61, %111 : vector<16x32xf32>
    %113 = arith.truncf %112 : vector<16x32xf32> to vector<16x32xbf16>
    %cst_29 = arith.constant dense<0.000000e+00> : vector<16x16xf32>
    %114 = tpu.matmul %64, %110, %cst_29 {dimension_numbers = #tpu.dot_dimension_numbers<[1], [1], [0], [0], [0, 0, 1, 0], [], []>} : vector<16x32xbf16>, vector<16x32xbf16>, vector<16x16xf32> -> vector<16x16xf32>
    %115 = arith.addf %114, %1 : vector<16x16xf32>
    %cst_30 = arith.constant dense<0xFF800000> : vector<16xf32>
    %116 = vector.multi_reduction <maximumf>, %115, %cst_30 [1] : vector<16x16xf32> to vector<16xf32>
    %117 = vector.shape_cast %116 : vector<16xf32> to vector<16x1xf32>
    %118 = vector.broadcast %117 : vector<16x1xf32> to vector<16x16xf32>
    %119 = arith.subf %115, %118 : vector<16x16xf32>
    %120 = math.exp %119 : vector<16x16xf32>
    %cst_31 = arith.constant dense<0.000000e+00> : vector<16xf32>
    %121 = vector.multi_reduction <add>, %120, %cst_31 [1] : vector<16x16xf32> to vector<16xf32>
    %122 = vector.shape_cast %121 : vector<16xf32> to vector<16x1xf32>
    %123 = tpu.reciprocal %122 {approx = true} : vector<16x1xf32> -> vector<16x1xf32>
    %124 = vector.broadcast %123 : vector<16x1xf32> to vector<16x16xf32>
    %125 = arith.mulf %120, %124 : vector<16x16xf32>
    %126 = arith.truncf %125 : vector<16x16xf32> to vector<16x16xbf16>
    %cst_32 = arith.constant dense<0.000000e+00> : vector<16x32xf32>
    %127 = tpu.matmul %126, %113, %cst_32 {dimension_numbers = #tpu.dot_dimension_numbers<[1], [0], [0], [1], [0, 0, 1, 1], [], []>} : vector<16x16xbf16>, vector<16x32xbf16>, vector<16x32xf32> -> vector<16x32xf32>
    %128 = arith.addf %107, %127 : vector<16x32xf32>
    %129 = vector.broadcast %32 : vector<1x32xf32> to vector<16x32xf32>
    %130 = arith.mulf %60, %129 : vector<16x32xf32>
    %131 = arith.truncf %130 : vector<16x32xf32> to vector<16x32xbf16>
    %132 = vector.broadcast %32 : vector<1x32xf32> to vector<16x32xf32>
    %133 = arith.mulf %61, %132 : vector<16x32xf32>
    %134 = arith.truncf %133 : vector<16x32xf32> to vector<16x32xbf16>
    %cst_33 = arith.constant dense<0.000000e+00> : vector<16x16xf32>
    %135 = tpu.matmul %64, %131, %cst_33 {dimension_numbers = #tpu.dot_dimension_numbers<[1], [1], [0], [0], [0, 0, 1, 0], [], []>} : vector<16x32xbf16>, vector<16x32xbf16>, vector<16x16xf32> -> vector<16x16xf32>
    %136 = arith.addf %135, %1 : vector<16x16xf32>
    %cst_34 = arith.constant dense<0xFF800000> : vector<16xf32>
    %137 = vector.multi_reduction <maximumf>, %136, %cst_34 [1] : vector<16x16xf32> to vector<16xf32>
    %138 = vector.shape_cast %137 : vector<16xf32> to vector<16x1xf32>
    %139 = vector.broadcast %138 : vector<16x1xf32> to vector<16x16xf32>
    %140 = arith.subf %136, %139 : vector<16x16xf32>
    %141 = math.exp %140 : vector<16x16xf32>
    %cst_35 = arith.constant dense<0.000000e+00> : vector<16xf32>
    %142 = vector.multi_reduction <add>, %141, %cst_35 [1] : vector<16x16xf32> to vector<16xf32>
    %143 = vector.shape_cast %142 : vector<16xf32> to vector<16x1xf32>
    %144 = tpu.reciprocal %143 {approx = true} : vector<16x1xf32> -> vector<16x1xf32>
    %145 = vector.broadcast %144 : vector<16x1xf32> to vector<16x16xf32>
    %146 = arith.mulf %141, %145 : vector<16x16xf32>
    %147 = arith.truncf %146 : vector<16x16xf32> to vector<16x16xbf16>
    %cst_36 = arith.constant dense<0.000000e+00> : vector<16x32xf32>
    %148 = tpu.matmul %147, %134, %cst_36 {dimension_numbers = #tpu.dot_dimension_numbers<[1], [0], [0], [1], [0, 0, 1, 1], [], []>} : vector<16x16xbf16>, vector<16x32xbf16>, vector<16x32xf32> -> vector<16x32xf32>
    %149 = arith.addf %128, %148 : vector<16x32xf32>
    %150 = arith.truncf %149 : vector<16x32xf32> to vector<16x32xbf16>
    %c0_37 = arith.constant 0 : index
    %c0_38 = arith.constant 0 : index
    %c0_39 = arith.constant 0 : index
    %151 = vector.load %arg6[%c0_37, %c0_38, %c0_39] : memref<2x32x32xbf16, #tpu.memory_space<vmem>>, vector<1x32x32xbf16>
    %152 = vector.shape_cast %151 : vector<1x32x32xbf16> to vector<32x32xbf16>
    %cst_40 = arith.constant dense<0.000000e+00> : vector<16x32xf32>
    %153 = tpu.matmul %150, %152, %cst_40 {dimension_numbers = #tpu.dot_dimension_numbers<[1], [0], [0], [1], [0, 0, 1, 1], [], []>} : vector<16x32xbf16>, vector<32x32xbf16>, vector<16x32xf32> -> vector<16x32xf32>
    %154 = arith.addf %0, %153 : vector<16x32xf32>
    %c0_41 = arith.constant 0 : index
    %c0_42 = arith.constant 0 : index
    %c0_43 = arith.constant 0 : index
    %155 = vector.load %arg7[%c0_41, %c0_42, %c0_43] : memref<2x1x32xf32, #tpu.memory_space<vmem>>, vector<1x1x32xf32>
    %156 = vector.shape_cast %155 : vector<1x1x32xf32> to vector<1x32xf32>
    %157 = arith.mulf %154, %154 : vector<16x32xf32>
    %cst_44 = arith.constant dense<0.000000e+00> : vector<16xf32>
    %158 = vector.multi_reduction <add>, %157, %cst_44 [1] : vector<16x32xf32> to vector<16xf32>
    %159 = vector.shape_cast %158 : vector<16xf32> to vector<16x1xf32>
    %cst_45 = arith.constant 3.200000e+01 : f32
    %160 = vector.broadcast %cst_45 : f32 to vector<16x1xf32>
    %161 = arith.divf %159, %160 : vector<16x1xf32>
    %cst_46 = arith.constant 9.99999974E-6 : f32
    %162 = vector.broadcast %cst_46 : f32 to vector<16x1xf32>
    %163 = arith.addf %161, %162 : vector<16x1xf32>
    %164 = math.rsqrt %163 : vector<16x1xf32>
    %165 = vector.broadcast %164 : vector<16x1xf32> to vector<16x32xf32>
    %166 = arith.mulf %154, %165 : vector<16x32xf32>
    %167 = vector.broadcast %156 : vector<1x32xf32> to vector<16x32xf32>
    %168 = arith.mulf %166, %167 : vector<16x32xf32>
    %169 = arith.truncf %168 : vector<16x32xf32> to vector<16x32xbf16>
    %c0_47 = arith.constant 0 : index
    %c0_48 = arith.constant 0 : index
    %c0_49 = arith.constant 0 : index
    %170 = vector.load %arg8[%c0_47, %c0_48, %c0_49] : memref<2x32x128xbf16, #tpu.memory_space<vmem>>, vector<1x32x128xbf16>
    %171 = vector.shape_cast %170 : vector<1x32x128xbf16> to vector<32x128xbf16>
    %cst_50 = arith.constant dense<0.000000e+00> : vector<16x128xf32>
    %172 = tpu.matmul %169, %171, %cst_50 {dimension_numbers = #tpu.dot_dimension_numbers<[1], [0], [0], [1], [0, 0, 1, 1], [], []>} : vector<16x32xbf16>, vector<32x128xbf16>, vector<16x128xf32> -> vector<16x128xf32>
    %173 = vector.extract_strided_slice %172 {offsets = [0, 0], sizes = [16, 64], strides = [1, 1]} : vector<16x128xf32> to vector<16x64xf32>
    %174 = vector.extract_strided_slice %172 {offsets = [0, 64], sizes = [16, 64], strides = [1, 1]} : vector<16x128xf32> to vector<16x64xf32>
    %175 = arith.negf %173 : vector<16x64xf32>
    %176 = math.exp %175 : vector<16x64xf32>
    %cst_51 = arith.constant 1.000000e+00 : f32
    %177 = vector.broadcast %cst_51 : f32 to vector<16x64xf32>
    %178 = arith.addf %177, %176 : vector<16x64xf32>
    %179 = arith.divf %177, %178 : vector<16x64xf32>
    %180 = arith.mulf %173, %179 : vector<16x64xf32>
    %181 = arith.mulf %180, %174 : vector<16x64xf32>
    %182 = arith.truncf %181 : vector<16x64xf32> to vector<16x64xbf16>
    %c0_52 = arith.constant 0 : index
    %c0_53 = arith.constant 0 : index
    %c0_54 = arith.constant 0 : index
    %183 = vector.load %arg9[%c0_52, %c0_53, %c0_54] : memref<2x64x32xbf16, #tpu.memory_space<vmem>>, vector<1x64x32xbf16>
    %184 = vector.shape_cast %183 : vector<1x64x32xbf16> to vector<64x32xbf16>
    %cst_55 = arith.constant dense<0.000000e+00> : vector<16x32xf32>
    %185 = tpu.matmul %182, %184, %cst_55 {dimension_numbers = #tpu.dot_dimension_numbers<[1], [0], [0], [1], [0, 0, 1, 1], [], []>} : vector<16x64xbf16>, vector<64x32xbf16>, vector<16x32xf32> -> vector<16x32xf32>
    %186 = arith.addf %154, %185 : vector<16x32xf32>
    %c1 = arith.constant 1 : index
    %c0_56 = arith.constant 0 : index
    %c0_57 = arith.constant 0 : index
    %187 = vector.load %arg4[%c1, %c0_56, %c0_57] : memref<2x1x32xf32, #tpu.memory_space<vmem>>, vector<1x1x32xf32>
    %188 = vector.shape_cast %187 : vector<1x1x32xf32> to vector<1x32xf32>
    %189 = arith.mulf %186, %186 : vector<16x32xf32>
    %cst_58 = arith.constant dense<0.000000e+00> : vector<16xf32>
    %190 = vector.multi_reduction <add>, %189, %cst_58 [1] : vector<16x32xf32> to vector<16xf32>
    %191 = vector.shape_cast %190 : vector<16xf32> to vector<16x1xf32>
    %cst_59 = arith.constant 3.200000e+01 : f32
    %192 = vector.broadcast %cst_59 : f32 to vector<16x1xf32>
    %193 = arith.divf %191, %192 : vector<16x1xf32>
    %cst_60 = arith.constant 9.99999974E-6 : f32
    %194 = vector.broadcast %cst_60 : f32 to vector<16x1xf32>
    %195 = arith.addf %193, %194 : vector<16x1xf32>
    %196 = math.rsqrt %195 : vector<16x1xf32>
    %197 = vector.broadcast %196 : vector<16x1xf32> to vector<16x32xf32>
    %198 = arith.mulf %186, %197 : vector<16x32xf32>
    %199 = vector.broadcast %188 : vector<1x32xf32> to vector<16x32xf32>
    %200 = arith.mulf %198, %199 : vector<16x32xf32>
    %201 = arith.truncf %200 : vector<16x32xf32> to vector<16x32xbf16>
    %c1_61 = arith.constant 1 : index
    %c0_62 = arith.constant 0 : index
    %c0_63 = arith.constant 0 : index
    %202 = vector.load %arg5[%c1_61, %c0_62, %c0_63] : memref<2x32x160xbf16, #tpu.memory_space<vmem>>, vector<1x32x160xbf16>
    %203 = vector.shape_cast %202 : vector<1x32x160xbf16> to vector<32x160xbf16>
    %cst_64 = arith.constant dense<0.000000e+00> : vector<16x160xf32>
    %204 = tpu.matmul %201, %203, %cst_64 {dimension_numbers = #tpu.dot_dimension_numbers<[1], [0], [0], [1], [0, 0, 1, 1], [], []>} : vector<16x32xbf16>, vector<32x160xbf16>, vector<16x160xf32> -> vector<16x160xf32>
    %205 = vector.extract_strided_slice %204 {offsets = [0, 0], sizes = [16, 32], strides = [1, 1]} : vector<16x160xf32> to vector<16x32xf32>
    %206 = arith.mulf %205, %2 : vector<16x32xf32>
    %207 = vector.extract_strided_slice %204 {offsets = [0, 32], sizes = [16, 32], strides = [1, 1]} : vector<16x160xf32> to vector<16x32xf32>
    %208 = arith.mulf %207, %3 : vector<16x32xf32>
    %209 = arith.addf %206, %208 : vector<16x32xf32>
    %210 = vector.extract_strided_slice %204 {offsets = [0, 64], sizes = [16, 32], strides = [1, 1]} : vector<16x160xf32> to vector<16x32xf32>
    %211 = arith.mulf %210, %2 : vector<16x32xf32>
    %212 = vector.extract_strided_slice %204 {offsets = [0, 96], sizes = [16, 32], strides = [1, 1]} : vector<16x160xf32> to vector<16x32xf32>
    %213 = arith.mulf %212, %3 : vector<16x32xf32>
    %214 = arith.addf %211, %213 : vector<16x32xf32>
    %215 = vector.extract_strided_slice %204 {offsets = [0, 128], sizes = [16, 32], strides = [1, 1]} : vector<16x160xf32> to vector<16x32xf32>
    %cst_65 = arith.constant 0.353553385 : f32
    %216 = vector.broadcast %cst_65 : f32 to vector<16x32xf32>
    %217 = arith.mulf %209, %216 : vector<16x32xf32>
    %218 = arith.truncf %217 : vector<16x32xf32> to vector<16x32xbf16>
    %cst_66 = arith.constant 0.000000e+00 : f32
    %219 = vector.broadcast %cst_66 : f32 to vector<16x32xf32>
    %220 = vector.broadcast %11 : vector<1x32xf32> to vector<16x32xf32>
    %221 = arith.mulf %214, %220 : vector<16x32xf32>
    %222 = arith.truncf %221 : vector<16x32xf32> to vector<16x32xbf16>
    %223 = vector.broadcast %11 : vector<1x32xf32> to vector<16x32xf32>
    %224 = arith.mulf %215, %223 : vector<16x32xf32>
    %225 = arith.truncf %224 : vector<16x32xf32> to vector<16x32xbf16>
    %cst_67 = arith.constant dense<0.000000e+00> : vector<16x16xf32>
    %226 = tpu.matmul %218, %222, %cst_67 {dimension_numbers = #tpu.dot_dimension_numbers<[1], [1], [0], [0], [0, 0, 1, 0], [], []>} : vector<16x32xbf16>, vector<16x32xbf16>, vector<16x16xf32> -> vector<16x16xf32>
    %227 = arith.addf %226, %1 : vector<16x16xf32>
    %cst_68 = arith.constant dense<0xFF800000> : vector<16xf32>
    %228 = vector.multi_reduction <maximumf>, %227, %cst_68 [1] : vector<16x16xf32> to vector<16xf32>
    %229 = vector.shape_cast %228 : vector<16xf32> to vector<16x1xf32>
    %230 = vector.broadcast %229 : vector<16x1xf32> to vector<16x16xf32>
    %231 = arith.subf %227, %230 : vector<16x16xf32>
    %232 = math.exp %231 : vector<16x16xf32>
    %cst_69 = arith.constant dense<0.000000e+00> : vector<16xf32>
    %233 = vector.multi_reduction <add>, %232, %cst_69 [1] : vector<16x16xf32> to vector<16xf32>
    %234 = vector.shape_cast %233 : vector<16xf32> to vector<16x1xf32>
    %235 = tpu.reciprocal %234 {approx = true} : vector<16x1xf32> -> vector<16x1xf32>
    %236 = vector.broadcast %235 : vector<16x1xf32> to vector<16x16xf32>
    %237 = arith.mulf %232, %236 : vector<16x16xf32>
    %238 = arith.truncf %237 : vector<16x16xf32> to vector<16x16xbf16>
    %cst_70 = arith.constant dense<0.000000e+00> : vector<16x32xf32>
    %239 = tpu.matmul %238, %225, %cst_70 {dimension_numbers = #tpu.dot_dimension_numbers<[1], [0], [0], [1], [0, 0, 1, 1], [], []>} : vector<16x16xbf16>, vector<16x32xbf16>, vector<16x32xf32> -> vector<16x32xf32>
    %240 = arith.addf %219, %239 : vector<16x32xf32>
    %241 = vector.broadcast %18 : vector<1x32xf32> to vector<16x32xf32>
    %242 = arith.mulf %214, %241 : vector<16x32xf32>
    %243 = arith.truncf %242 : vector<16x32xf32> to vector<16x32xbf16>
    %244 = vector.broadcast %18 : vector<1x32xf32> to vector<16x32xf32>
    %245 = arith.mulf %215, %244 : vector<16x32xf32>
    %246 = arith.truncf %245 : vector<16x32xf32> to vector<16x32xbf16>
    %cst_71 = arith.constant dense<0.000000e+00> : vector<16x16xf32>
    %247 = tpu.matmul %218, %243, %cst_71 {dimension_numbers = #tpu.dot_dimension_numbers<[1], [1], [0], [0], [0, 0, 1, 0], [], []>} : vector<16x32xbf16>, vector<16x32xbf16>, vector<16x16xf32> -> vector<16x16xf32>
    %248 = arith.addf %247, %1 : vector<16x16xf32>
    %cst_72 = arith.constant dense<0xFF800000> : vector<16xf32>
    %249 = vector.multi_reduction <maximumf>, %248, %cst_72 [1] : vector<16x16xf32> to vector<16xf32>
    %250 = vector.shape_cast %249 : vector<16xf32> to vector<16x1xf32>
    %251 = vector.broadcast %250 : vector<16x1xf32> to vector<16x16xf32>
    %252 = arith.subf %248, %251 : vector<16x16xf32>
    %253 = math.exp %252 : vector<16x16xf32>
    %cst_73 = arith.constant dense<0.000000e+00> : vector<16xf32>
    %254 = vector.multi_reduction <add>, %253, %cst_73 [1] : vector<16x16xf32> to vector<16xf32>
    %255 = vector.shape_cast %254 : vector<16xf32> to vector<16x1xf32>
    %256 = tpu.reciprocal %255 {approx = true} : vector<16x1xf32> -> vector<16x1xf32>
    %257 = vector.broadcast %256 : vector<16x1xf32> to vector<16x16xf32>
    %258 = arith.mulf %253, %257 : vector<16x16xf32>
    %259 = arith.truncf %258 : vector<16x16xf32> to vector<16x16xbf16>
    %cst_74 = arith.constant dense<0.000000e+00> : vector<16x32xf32>
    %260 = tpu.matmul %259, %246, %cst_74 {dimension_numbers = #tpu.dot_dimension_numbers<[1], [0], [0], [1], [0, 0, 1, 1], [], []>} : vector<16x16xbf16>, vector<16x32xbf16>, vector<16x32xf32> -> vector<16x32xf32>
    %261 = arith.addf %240, %260 : vector<16x32xf32>
    %262 = vector.broadcast %25 : vector<1x32xf32> to vector<16x32xf32>
    %263 = arith.mulf %214, %262 : vector<16x32xf32>
    %264 = arith.truncf %263 : vector<16x32xf32> to vector<16x32xbf16>
    %265 = vector.broadcast %25 : vector<1x32xf32> to vector<16x32xf32>
    %266 = arith.mulf %215, %265 : vector<16x32xf32>
    %267 = arith.truncf %266 : vector<16x32xf32> to vector<16x32xbf16>
    %cst_75 = arith.constant dense<0.000000e+00> : vector<16x16xf32>
    %268 = tpu.matmul %218, %264, %cst_75 {dimension_numbers = #tpu.dot_dimension_numbers<[1], [1], [0], [0], [0, 0, 1, 0], [], []>} : vector<16x32xbf16>, vector<16x32xbf16>, vector<16x16xf32> -> vector<16x16xf32>
    %269 = arith.addf %268, %1 : vector<16x16xf32>
    %cst_76 = arith.constant dense<0xFF800000> : vector<16xf32>
    %270 = vector.multi_reduction <maximumf>, %269, %cst_76 [1] : vector<16x16xf32> to vector<16xf32>
    %271 = vector.shape_cast %270 : vector<16xf32> to vector<16x1xf32>
    %272 = vector.broadcast %271 : vector<16x1xf32> to vector<16x16xf32>
    %273 = arith.subf %269, %272 : vector<16x16xf32>
    %274 = math.exp %273 : vector<16x16xf32>
    %cst_77 = arith.constant dense<0.000000e+00> : vector<16xf32>
    %275 = vector.multi_reduction <add>, %274, %cst_77 [1] : vector<16x16xf32> to vector<16xf32>
    %276 = vector.shape_cast %275 : vector<16xf32> to vector<16x1xf32>
    %277 = tpu.reciprocal %276 {approx = true} : vector<16x1xf32> -> vector<16x1xf32>
    %278 = vector.broadcast %277 : vector<16x1xf32> to vector<16x16xf32>
    %279 = arith.mulf %274, %278 : vector<16x16xf32>
    %280 = arith.truncf %279 : vector<16x16xf32> to vector<16x16xbf16>
    %cst_78 = arith.constant dense<0.000000e+00> : vector<16x32xf32>
    %281 = tpu.matmul %280, %267, %cst_78 {dimension_numbers = #tpu.dot_dimension_numbers<[1], [0], [0], [1], [0, 0, 1, 1], [], []>} : vector<16x16xbf16>, vector<16x32xbf16>, vector<16x32xf32> -> vector<16x32xf32>
    %282 = arith.addf %261, %281 : vector<16x32xf32>
    %283 = vector.broadcast %32 : vector<1x32xf32> to vector<16x32xf32>
    %284 = arith.mulf %214, %283 : vector<16x32xf32>
    %285 = arith.truncf %284 : vector<16x32xf32> to vector<16x32xbf16>
    %286 = vector.broadcast %32 : vector<1x32xf32> to vector<16x32xf32>
    %287 = arith.mulf %215, %286 : vector<16x32xf32>
    %288 = arith.truncf %287 : vector<16x32xf32> to vector<16x32xbf16>
    %cst_79 = arith.constant dense<0.000000e+00> : vector<16x16xf32>
    %289 = tpu.matmul %218, %285, %cst_79 {dimension_numbers = #tpu.dot_dimension_numbers<[1], [1], [0], [0], [0, 0, 1, 0], [], []>} : vector<16x32xbf16>, vector<16x32xbf16>, vector<16x16xf32> -> vector<16x16xf32>
    %290 = arith.addf %289, %1 : vector<16x16xf32>
    %cst_80 = arith.constant dense<0xFF800000> : vector<16xf32>
    %291 = vector.multi_reduction <maximumf>, %290, %cst_80 [1] : vector<16x16xf32> to vector<16xf32>
    %292 = vector.shape_cast %291 : vector<16xf32> to vector<16x1xf32>
    %293 = vector.broadcast %292 : vector<16x1xf32> to vector<16x16xf32>
    %294 = arith.subf %290, %293 : vector<16x16xf32>
    %295 = math.exp %294 : vector<16x16xf32>
    %cst_81 = arith.constant dense<0.000000e+00> : vector<16xf32>
    %296 = vector.multi_reduction <add>, %295, %cst_81 [1] : vector<16x16xf32> to vector<16xf32>
    %297 = vector.shape_cast %296 : vector<16xf32> to vector<16x1xf32>
    %298 = tpu.reciprocal %297 {approx = true} : vector<16x1xf32> -> vector<16x1xf32>
    %299 = vector.broadcast %298 : vector<16x1xf32> to vector<16x16xf32>
    %300 = arith.mulf %295, %299 : vector<16x16xf32>
    %301 = arith.truncf %300 : vector<16x16xf32> to vector<16x16xbf16>
    %cst_82 = arith.constant dense<0.000000e+00> : vector<16x32xf32>
    %302 = tpu.matmul %301, %288, %cst_82 {dimension_numbers = #tpu.dot_dimension_numbers<[1], [0], [0], [1], [0, 0, 1, 1], [], []>} : vector<16x16xbf16>, vector<16x32xbf16>, vector<16x32xf32> -> vector<16x32xf32>
    %303 = arith.addf %282, %302 : vector<16x32xf32>
    %304 = arith.truncf %303 : vector<16x32xf32> to vector<16x32xbf16>
    %c1_83 = arith.constant 1 : index
    %c0_84 = arith.constant 0 : index
    %c0_85 = arith.constant 0 : index
    %305 = vector.load %arg6[%c1_83, %c0_84, %c0_85] : memref<2x32x32xbf16, #tpu.memory_space<vmem>>, vector<1x32x32xbf16>
    %306 = vector.shape_cast %305 : vector<1x32x32xbf16> to vector<32x32xbf16>
    %cst_86 = arith.constant dense<0.000000e+00> : vector<16x32xf32>
    %307 = tpu.matmul %304, %306, %cst_86 {dimension_numbers = #tpu.dot_dimension_numbers<[1], [0], [0], [1], [0, 0, 1, 1], [], []>} : vector<16x32xbf16>, vector<32x32xbf16>, vector<16x32xf32> -> vector<16x32xf32>
    %308 = arith.addf %186, %307 : vector<16x32xf32>
    %c1_87 = arith.constant 1 : index
    %c0_88 = arith.constant 0 : index
    %c0_89 = arith.constant 0 : index
    %309 = vector.load %arg7[%c1_87, %c0_88, %c0_89] : memref<2x1x32xf32, #tpu.memory_space<vmem>>, vector<1x1x32xf32>
    %310 = vector.shape_cast %309 : vector<1x1x32xf32> to vector<1x32xf32>
    %311 = arith.mulf %308, %308 : vector<16x32xf32>
    %cst_90 = arith.constant dense<0.000000e+00> : vector<16xf32>
    %312 = vector.multi_reduction <add>, %311, %cst_90 [1] : vector<16x32xf32> to vector<16xf32>
    %313 = vector.shape_cast %312 : vector<16xf32> to vector<16x1xf32>
    %cst_91 = arith.constant 3.200000e+01 : f32
    %314 = vector.broadcast %cst_91 : f32 to vector<16x1xf32>
    %315 = arith.divf %313, %314 : vector<16x1xf32>
    %cst_92 = arith.constant 9.99999974E-6 : f32
    %316 = vector.broadcast %cst_92 : f32 to vector<16x1xf32>
    %317 = arith.addf %315, %316 : vector<16x1xf32>
    %318 = math.rsqrt %317 : vector<16x1xf32>
    %319 = vector.broadcast %318 : vector<16x1xf32> to vector<16x32xf32>
    %320 = arith.mulf %308, %319 : vector<16x32xf32>
    %321 = vector.broadcast %310 : vector<1x32xf32> to vector<16x32xf32>
    %322 = arith.mulf %320, %321 : vector<16x32xf32>
    %323 = arith.truncf %322 : vector<16x32xf32> to vector<16x32xbf16>
    %c1_93 = arith.constant 1 : index
    %c0_94 = arith.constant 0 : index
    %c0_95 = arith.constant 0 : index
    %324 = vector.load %arg8[%c1_93, %c0_94, %c0_95] : memref<2x32x128xbf16, #tpu.memory_space<vmem>>, vector<1x32x128xbf16>
    %325 = vector.shape_cast %324 : vector<1x32x128xbf16> to vector<32x128xbf16>
    %cst_96 = arith.constant dense<0.000000e+00> : vector<16x128xf32>
    %326 = tpu.matmul %323, %325, %cst_96 {dimension_numbers = #tpu.dot_dimension_numbers<[1], [0], [0], [1], [0, 0, 1, 1], [], []>} : vector<16x32xbf16>, vector<32x128xbf16>, vector<16x128xf32> -> vector<16x128xf32>
    %327 = vector.extract_strided_slice %326 {offsets = [0, 0], sizes = [16, 64], strides = [1, 1]} : vector<16x128xf32> to vector<16x64xf32>
    %328 = vector.extract_strided_slice %326 {offsets = [0, 64], sizes = [16, 64], strides = [1, 1]} : vector<16x128xf32> to vector<16x64xf32>
    %329 = arith.negf %327 : vector<16x64xf32>
    %330 = math.exp %329 : vector<16x64xf32>
    %cst_97 = arith.constant 1.000000e+00 : f32
    %331 = vector.broadcast %cst_97 : f32 to vector<16x64xf32>
    %332 = arith.addf %331, %330 : vector<16x64xf32>
    %333 = arith.divf %331, %332 : vector<16x64xf32>
    %334 = arith.mulf %327, %333 : vector<16x64xf32>
    %335 = arith.mulf %334, %328 : vector<16x64xf32>
    %336 = arith.truncf %335 : vector<16x64xf32> to vector<16x64xbf16>
    %c1_98 = arith.constant 1 : index
    %c0_99 = arith.constant 0 : index
    %c0_100 = arith.constant 0 : index
    %337 = vector.load %arg9[%c1_98, %c0_99, %c0_100] : memref<2x64x32xbf16, #tpu.memory_space<vmem>>, vector<1x64x32xbf16>
    %338 = vector.shape_cast %337 : vector<1x64x32xbf16> to vector<64x32xbf16>
    %cst_101 = arith.constant dense<0.000000e+00> : vector<16x32xf32>
    %339 = tpu.matmul %336, %338, %cst_101 {dimension_numbers = #tpu.dot_dimension_numbers<[1], [0], [0], [1], [0, 0, 1, 1], [], []>} : vector<16x64xbf16>, vector<64x32xbf16>, vector<16x32xf32> -> vector<16x32xf32>
    %340 = arith.addf %308, %339 : vector<16x32xf32>
    %c0_102 = arith.constant 0 : index
    %c0_103 = arith.constant 0 : index
    %341 = vector.load %arg10[%c0_102, %c0_103] : memref<1x32xf32, #tpu.memory_space<vmem>>, vector<1x32xf32>
    %342 = arith.mulf %340, %340 : vector<16x32xf32>
    %cst_104 = arith.constant dense<0.000000e+00> : vector<16xf32>
    %343 = vector.multi_reduction <add>, %342, %cst_104 [1] : vector<16x32xf32> to vector<16xf32>
    %344 = vector.shape_cast %343 : vector<16xf32> to vector<16x1xf32>
    %cst_105 = arith.constant 3.200000e+01 : f32
    %345 = vector.broadcast %cst_105 : f32 to vector<16x1xf32>
    %346 = arith.divf %344, %345 : vector<16x1xf32>
    %cst_106 = arith.constant 9.99999974E-6 : f32
    %347 = vector.broadcast %cst_106 : f32 to vector<16x1xf32>
    %348 = arith.addf %346, %347 : vector<16x1xf32>
    %349 = math.rsqrt %348 : vector<16x1xf32>
    %350 = vector.broadcast %349 : vector<16x1xf32> to vector<16x32xf32>
    %351 = arith.mulf %340, %350 : vector<16x32xf32>
    %352 = vector.broadcast %341 : vector<1x32xf32> to vector<16x32xf32>
    %353 = arith.mulf %351, %352 : vector<16x32xf32>
    %c0_107 = arith.constant 0 : index
    %c0_108 = arith.constant 0 : index
    %354 = vector.load %arg11[%c0_107, %c0_108] : memref<16x32xf32, #tpu.memory_space<vmem>>, vector<16x32xf32>
    tpu.vector_store %arg11[%c0_107, %c0_108], %353 {strides = array<i32>} : memref<16x32xf32, #tpu.memory_space<vmem>>, vector<16x32xf32>,
    return
  }
}

</mosaic_0001>

<bundles_post_ra>
// kernel: llama_regression_forward.1
= control target key start
LH: loop header
LB: loop body
LE: loop exit
PB: predicated region body
PF: predicated region fallthrough
CT: control target
= control target key end

     0   :  { %vm72_vm0 = vcmask 261120   ;;  %v2327_v7 = vmov 0   ;;  %v47_v11 = vlaneseq  ;;  %v2328_v14 = vmov 0.0   ;;  %s2329_s13 = smov 96   ;;  %s2330_s14 = smov 64   ;;  %s2929_s0 = inlined_call_operand.vmem [shape: f32[16,32], index: 0, kind: input, shape index: {}]   ;;  %s2930_s5 = inlined_call_operand.vmem [shape: bf16[2,32,160], index: 5, kind: input, shape index: {}]   ;;  %s2931_s3 = inlined_call_operand.vmem [shape: f32[16,32], index: 3, kind: input, shape index: {}]   ;;  %s2932_s2 = inlined_call_operand.vmem [shape: f32[16,32], index: 2, kind: input, shape index: {}]   ;;  %s2933_s4 = inlined_call_operand.vmem [shape: f32[2,1,32], index: 4, kind: input, shape index: {}]   ;;  %s2934_s1 = inlined_call_operand.vmem [shape: f32[16,16], index: 1, kind: input, shape index: {}]   ;;  %s2935_s6 = inlined_call_operand.vmem [shape: bf16[2,32,32], index: 6, kind: input, shape index: {}]   ;;  %s2936_s8 = inlined_call_operand.vmem [shape: bf16[2,32,128], index: 8, kind: input, shape index: {}]   ;;  %s2937_s7 = inlined_call_operand.vmem [shape: f32[2,1,32], index: 7, kind: input, shape index: {}]   ;;  %s2938_s9 = inlined_call_operand.vmem [shape: bf16[2,64,32], index: 9, kind: input, shape index: {}]   ;;  %s2939_s10 = inlined_call_operand.vmem [shape: f32[1,32], index: 10, kind: input, shape index: {}]   ;;  %s2940_s11 = inlined_call_operand.vmem [shape: f32[16,32], index: 11, kind: output, shape index: {}]  }
   0x1   :  { %v2396_v0 = vld [vmem:[%s2929_s0] sm:$0xff]  ;;  %v2401_v1 = vld [vmem:[%s2929_s0 + $0x8] sm:$0xff]  ;;  %156 = vmatprep.mubr.bf16.mxu1 %v2327_v7  ;;  %v2202_v9 = vld [vmem:[%s2930_s5 + $0x14] ss:$8 sps:$4 sm:$0xff]   ;;  %2023 = vmatprep.subr.bf16.mxu0 %v2328_v14  ;;  %s2331_s19 = smov 32   ;;  %vm2332_vm11 = vmmov 0  }
   0x2   :  { %v70_v2 = vmul.f32 %v2396_v0, %v2396_v0  ;;  %v71_v3 = vmul.f32 %v2401_v1, %v2401_v1  ;;  %v2199_v6 = vld [vmem:[%s2930_s5 + $0x4] ss:$8 sps:$4 sm:$0xff]   ;;  %v2201_v8 = vld [vmem:[%s2930_s5] ss:$8 sps:$4 sm:$0xff]   ;;  %v2204_v10 = vld [vmem:[%s2930_s5 + $0x10] ss:$8 sps:$4 sm:$0xff]   ;;  %2025 = vmatprep.mubr.msk.bf16.mxu0 %vm2332_vm11, %v2328_v14 }
   0x3   :  { %124 = vmatprep.subr.bf16.mxu1 %v2199_v6  ;;  %v2425_v12 = vld [vmem:[%s2931_s3] sm:$0xff]  ;;  %v48_v15 = vand.u32 127, %v47_v11  ;;  %v46_v16 = vld [vmem:[%s2931_s3 + $0x8] sm:$0xff]  ;;  %vm280_vm12 = vcmask 130048   ;;  %vm930_vm13 = vcmask 523264  }
   0x4   :  { %v73_v4 = vsel %vm72_vm0, %v70_v2, 0.0  ;;  %v76_v5 = vsel %vm72_vm0, %v71_v3, 0.0  ;;  %125 = vmatpush1.bf16.msra.mxu1 %v2201_v8  ;;  %v2430_v13 = vld [vmem:[%s2932_s2] sm:$0xff]  ;;  %199 = vrot.lane.b32.xlu1 %v2425_v12, %s2329_s13  ;;  %v2445_v17 = vld [vmem:[%s2932_s2 + $0x8] sm:$0xff] }
   0x5   :  { %74 = vadd.xlane.f32.xlu0 %v73_v4  ;;  %126 = vmatprep.subr.bf16.mxu1 %v2202_v9  ;;  %vm54_vm1 = vcmp.ge.s32.totalorder %v48_v15, 8  ;;  %vm55_vm2 = vcmp.lt.s32.totalorder %v48_v15, 16  ;;  %v1884_v28 = vld [vmem:[%s2933_s4] ss:$0 sm:$0xff]  ;;  %vm50_vm4 = vcmp.lt.s32.totalorder %v48_v15, 8  ;;  %vm64_vm5 = vcmp.ge.s32.totalorder %v48_v15, 24 }
   0x6   :  { %vm56_vm3 = vmand %vm54_vm1, %vm55_vm2  ;;  %v2461_v33 = vsel %vm50_vm4, 1.0, %v2328_v14  ;;  %vm65_vm6 = vcmp.lt.s32.totalorder %v48_v15, 32  ;;  %vm59_vm8 = vcmp.ge.s32.totalorder %v48_v15, 16  ;;  %vm60_vm9 = vcmp.lt.s32.totalorder %v48_v15, 24 }
   0x7   :  { %v2450_v18 = vsel %vm56_vm3, 1.0, %v2328_v14  ;;  %vm66_vm7 = vmand %vm64_vm5, %vm65_vm6 }
   0x8   :  { %127 = vmatpush1.bf16.msra.mxu1 %v2204_v10  ;;  %201 = vrot.lane.b32.xlu1 %v46_v16, %s2329_s13  ;;  %v2466_v34 = vsel %vm66_vm7, 1.0, %v2328_v14  ;;  %vm61_vm10 = vmand %vm59_vm8, %vm60_vm9 }
   0x9   :  { %77 = vadd.xlane.f32.xlu0 %v76_v5  ;;  %2017 = vmatprep.subr.bf16.mxu1 %v2328_v14  ;;  %v2475_v37 = vsel %vm61_vm10, 1.0, %v2328_v14 }
   0xc   :  { %193 = vrot.lane.b32.xlu1 %v2445_v17, %s2330_s14 }
  0x10   :  { %305 = vrot.lane.b32.xlu1 %v2450_v18, %s2330_s14 }
  0x1f   :  { %191 = vrot.lane.b32.xlu0 %v2430_v13, %s2330_s14 }
  0x23   :  { %221 = vrot.lane.b32.xlu0 %v2461_v33, %s2330_s14 }
  0x27   :  { %599 = vrot.lane.b32.xlu0 %v2466_v34, %s2330_s14 }
  0x76   :  { %v2470_v35 = vpop.permute.xlu1 %199 }
  0x7a   :  { %v2494_v46 = vpop.permute.xlu1 %201 }
  0x7e   :  { %v2522_v56 = vpop.permute.xlu1 %193 }
  0x82   :  { %v2526_v58 = vpop.permute.xlu1 %305 }
  0x92   :  { %v75_v19 = vpop.xlane.xlu0 %74 }
  0x93   :  { %v80_v20 = vmul.f32 0.03125, %v75_v19 }
  0x95   :  { %v82_v21 = vadd.f32 1e-05, %v80_v20 }
  0x96   :  { %v78_v22 = vpop.xlane.xlu0 %77 }
  0x97   :  { %2227 = vrsqrt.f32 %v82_v21  ;;  %v81_v23 = vmul.f32 0.03125, %v78_v22 }
  0x99   :  { %v83_v24 = vadd.f32 1e-05, %v81_v23 }
  0x9a   :  { %v2524_v57 = vpop.permute.xlu0 %191 }
  0x9b   :  { %2229 = vrsqrt.f32 %v83_v24 }
  0x9e   :  { %v2528_v59 = vpop.permute.xlu0 %221 }
  0xa1   :  { %v2228_v25 = vpop.eup %2227 }
  0xa2   :  { %v86_v26 = vmul.f32 %v2228_v25, %v2396_v0  ;;  %v2532_v63 = vpop.permute.xlu0 %599 }
  0xa4   :  { %v94_v30 = vmul.f32 %v1884_v28, %v86_v26 }
  0xa5   :  { %v2230_v27 = vpop.eup %2229 }
  0xa6   :  { %v87_v29 = vmul.f32 %v2230_v27, %v2401_v1 }
  0xa8   :  { %v95_v31 = vmul.f32 %v1884_v28, %v87_v29 }
  0xaa   :  { %v96_v32 = vpack.c.bf16 %v95_v31, %v94_v30 }
  0xac   :  { %1889 = vmatmul.mubr.msk.bf16.vlgmr.msra.gmra.mrb[0].mxu1 %vm72_vm0, %v96_v32 }
  0xad   :  { %2019 = vmatprep.mubr.msk.bf16.mxu1 %vm2332_vm11, %v2328_v14 }
 0x17f   :  { %v2472_v36 = vpop.f32.mrb[0].mxu1 }
 0x180   :  { %v160_v38 = vpop.f32.mrb[1].mxu1  ;;  %v205_v39 = vmul.f32 %v2470_v35, %v2472_v36  ;;  %v197_v60 = vmul.f32 %v2524_v57, %v2472_v36  ;;  %v167_v29 = vmul.f32 %v2472_v36, %v2430_v13 }
 0x181   :  { %v2479_v40 = vpop.f32.mrb[2].mxu1  ;;  %v2482_v41 = vmul.f32 %v2461_v33, %v160_v38  ;;  %v2485_v42 = vmul.f32 %v2450_v18, %v160_v38  ;;  %v2488_v43 = vmul.f32 %v2475_v37, %v160_v38  ;;  %v2491_v44 = vmul.f32 %v2466_v34, %v160_v38 }
 0x182   :  { %209 = vrot.lane.b32.xlu1 %v205_v39, %s2329_s13  ;;  %v164_v45 = vpop.f32.mrb[3].mxu1  ;;  %v206_v51 = vmul.f32 %v2494_v46, %v2479_v40  ;;  %v198_v2 = vmul.f32 %v2522_v56, %v2479_v40  ;;  %v168_v32 = vmul.f32 %v2479_v40, %v2445_v17 }
 0x183   :  { %v2497_v47 = vmul.f32 %v2461_v33, %v164_v45  ;;  %v2500_v48 = vmul.f32 %v2450_v18, %v164_v45  ;;  %v2503_v49 = vmul.f32 %v2475_v37, %v164_v45  ;;  %v2506_v50 = vmul.f32 %v2466_v34, %v164_v45 }
 0x185   :  { %v313_v52 = vpack.c.bf16 %v2500_v48, %v2485_v42  ;;  %v229_v53 = vpack.c.bf16 %v2497_v47, %v2482_v41  ;;  %v481_v54 = vpack.c.bf16 %v2503_v49, %v2488_v43  ;;  %v607_v55 = vpack.c.bf16 %v2506_v50, %v2491_v44  ;;  %v2595_v42 = vld [vmem:[%s2934_s1] sm:$0xff]  ;;  %v2206_v44 = vld [vmem:[%s2935_s6 + $0x8] sm:$0xff]  }
 0x186   :  { %211 = vrot.lane.b32.xlu1 %v206_v51, %s2329_s13 }
 0x18a   :  { %171 = vrot.lane.b32.xlu1 %v2425_v12, %s2331_s19 }
 0x18e   :  { %173 = vrot.lane.b32.xlu1 %v46_v16, %s2331_s19 }
 0x192   :  { %473 = vrot.lane.b32.xlu1 %v2475_v37, %s2330_s14 }
 0x1f4   :  { %v210_v61 = vpop.permute.xlu1 %209 }
 0x1f5   :  { %v215_v62 = vadd.f32 %v210_v61, %v197_v60 }
 0x1f7   :  { %v602_v5 = vmul.f32 %v2532_v63, %v215_v62  ;;  %v308_v6 = vmul.f32 %v2526_v58, %v215_v62  ;;  %v224_v8 = vmul.f32 %v2528_v59, %v215_v62 }
 0x1f8   :  { %v212_v3 = vpop.permute.xlu1 %211 }
 0x1f9   :  { %v216_v4 = vadd.f32 %v212_v3, %v198_v2 }
 0x1fb   :  { %v309_v9 = vmul.f32 %v2526_v58, %v216_v4  ;;  %v225_v10 = vmul.f32 %v2528_v59, %v216_v4  ;;  %v603_v11 = vmul.f32 %v2532_v63, %v216_v4 }
 0x1fc   :  { %v2546_v12 = vpop.permute.xlu1 %171 }
 0x1fd   :  { %v177_v15 = vmul.f32 %v2546_v12, %v2472_v36  ;;  %v310_v16 = vpack.c.bf16 %v309_v9, %v308_v6  ;;  %v226_v19 = vpack.c.bf16 %v225_v10, %v224_v8  ;;  %v604_v20 = vpack.c.bf16 %v603_v11, %v602_v5 }
 0x1ff   :  { %181 = vrot.lane.b32.xlu0 %v177_v15, %s2329_s13  ;;  %315 = vrot.lane.b32.xlu1 %v310_v16, %s2330_s14 }
 0x200   :  { %v2552_v21 = vpop.permute.xlu1 %173 }
 0x201   :  { %v178_v22 = vmul.f32 %v2552_v21, %v2479_v40 }
 0x203   :  { %183 = vrot.lane.b32.xlu1 %v178_v22, %s2329_s13  ;;  %231 = vrot.lane.b32.xlu0 %v226_v19, %s2330_s14 }
 0x204   :  { %v2558_v23 = vpop.permute.xlu1 %473 }
 0x205   :  { %v476_v24 = vmul.f32 %v2558_v23, %v215_v62  ;;  %v477_v25 = vmul.f32 %v2558_v23, %v216_v4 }
 0x207   :  { %609 = vrot.lane.b32.xlu0 %v604_v20, %s2330_s14  ;;  %v478_v26 = vpack.c.bf16 %v477_v25, %v476_v24 }
 0x209   :  { %483 = vrot.lane.b32.xlu1 %v478_v26, %s2330_s14 }
 0x271   :  { %v316_v27 = vpop.permute.xlu1 %315  ;;  %v182_v28 = vpop.permute.xlu0 %181 }
 0x272   :  { %v318_v30 = vsel %vm72_vm0, %v316_v27, 0  ;;  %v187_v31 = vadd.f32 %v182_v28, %v167_v29 }
 0x273   :  { %2024 = vmatpush3.bf16.xpose.msra.mxu0 %v318_v30 }
 0x274   :  { %2041 = vmatprep.subr.bf16.mxu0 %v2328_v14  ;;  %v217_v60 = vmul.f32 0.35355338, %v187_v31 }
 0x275   :  { %v184_v38 = vpop.permute.xlu1 %183  ;;  %v232_v39 = vpop.permute.xlu0 %231 }
 0x276   :  { %v188_v45 = vadd.f32 %v184_v38, %v168_v32  ;;  %v237_v51 = vsel %vm72_vm0, %v232_v39, 0 }
 0x277   :  { %2018 = vmatpush3.bf16.xpose.msra.mxu1 %v237_v51 }
 0x278   :  { %v218_v61 = vmul.f32 0.35355338, %v188_v45  ;;  %2029 = vmatprep.subr.bf16.mxu1 %v2328_v14 }
 0x279   :  { %v610_v40 = vpop.permute.xlu0 %609 }
 0x27a   :  { %v219_v36 = vpack.c.bf16 %v218_v61, %v217_v60  ;;  %v612_v3 = vsel %vm72_vm0, %v610_v40, 0 }
 0x27b   :  { %v484_v62 = vpop.permute.xlu1 %483 }
 0x27c   :  { %v486_v2 = vsel %vm72_vm0, %v484_v62, 0  ;;  %2026 = vmatmul.mubr.msk.bf16.vlgmr.msra.gmra.mrb[0].mxu0 %vm72_vm0, %v219_v36 }
 0x27d   :  { %2042 = vmatpush3.bf16.xpose.msra.mxu0 %v486_v2  ;;  %2043 = vmatprep.mubr.msk.bf16.mxu0 %vm2332_vm11, %v2328_v14 }
 0x27e   :  { %2020 = vmatmul.mubr.msk.bf16.vlgmr.msra.gmra.mrb[4].mxu1 %vm72_vm0, %v219_v36  ;;  %2053 = vmatprep.subr.bf16.mxu0 %v2328_v14 }
 0x27f   :  { %2030 = vmatpush3.bf16.msra.mxu1 %v313_v52  ;;  %2031 = vmatprep.mubr.msk.bf16.mxu1 %vm2332_vm11, %v2328_v14  ;;  %v2600_v52 = vld [vmem:[%s2934_s1 + $0x8] sm:$0xff] }
 0x280   :  { %2035 = vmatprep.subr.bf16.mxu1 %v2328_v14 }
 0x284   :  { %2044 = vmatmul.mubr.msk.bf16.vlgmr.msra.gmra.mrb[4].mxu0 %vm72_vm0, %v219_v36 }
 0x285   :  { %2054 = vmatpush3.bf16.xpose.msra.mxu0 %v612_v3  ;;  %2055 = vmatprep.mubr.msk.bf16.mxu0 %vm2332_vm11, %v2328_v14 }
 0x286   :  { %2065 = vmatprep.subr.bf16.mxu0 %v2328_v14 }
 0x28c   :  { %2056 = vmatmul.mubr.msk.bf16.vlgmr.msra.gmra.mrb[8].mxu0 %vm72_vm0, %v219_v36 }
 0x28d   :  { %2069 = vmatprep.mubr.msk.bf16.mxu0 %vm2332_vm11, %v2328_v14 }
 0x34f   :  { %v354_v48 = vpop.f32.mrb[0].mxu0 }
 0x350   :  { %v355_v4 = vadd.f32 %v354_v48, %v2595_v42  ;;  %v2027_v5 = vpop.f32.mrb[1].mxu0 }
 0x351   :  { %v273_v6 = vpop.f32.mrb[4].mxu1  ;;  %v357_v8 = vpop.f32.mrb[2].mxu0 }
 0x352   :  { %v358_v9 = vadd.f32 %v357_v8, %v2600_v52  ;;  %v2021_v10 = vpop.f32.mrb[5].mxu1  ;;  %v2028_v11 = vpop.f32.mrb[3].mxu0  ;;  %v361_v15 = vsel %vm280_vm12, %v355_v4, -inf  ;;  %v274_v19 = vadd.f32 %v273_v6, %v2595_v42 }
 0x353   :  { %362 = vmax.xlane.f32.xlu1 %v361_v15  ;;  %v276_v16 = vpop.f32.mrb[6].mxu1 }
 0x354   :  { %v277_v20 = vadd.f32 %v276_v16, %v2600_v52  ;;  %v2022_v22 = vpop.f32.mrb[7].mxu1  ;;  %v364_v24 = vsel %vm280_vm12, %v358_v9, -inf  ;;  %v281_v29 = vsel %vm280_vm12, %v274_v19, -inf }
 0x355   :  { %365 = vmax.xlane.f32.xlu0 %v364_v24 }
 0x356   :  { %v284_v25 = vsel %vm280_vm12, %v277_v20, -inf }
 0x357   :  { %v522_v26 = vpop.f32.mrb[4].mxu0  ;;  %285 = vmax.xlane.f32.xlu1 %v284_v25 }
 0x358   :  { %v523_v27 = vadd.f32 %v522_v26, %v2595_v42  ;;  %v2045_v28 = vpop.f32.mrb[5].mxu0 }
 0x359   :  { %v525_v30 = vpop.f32.mrb[6].mxu0  ;;  %282 = vmax.xlane.f32.xlu0 %v281_v29 }
 0x35a   :  { %v526_v31 = vadd.f32 %v525_v30, %v2600_v52  ;;  %v2046_v32 = vpop.f32.mrb[7].mxu0  ;;  %v529_v38 = vsel %vm280_vm12, %v523_v27, -inf }
 0x35c   :  { %v532_v39 = vsel %vm280_vm12, %v526_v31, -inf }
 0x35d   :  { %530 = vmax.xlane.f32.xlu0 %v529_v38  ;;  %533 = vmax.xlane.f32.xlu1 %v532_v39 }
 0x35f   :  { %v648_v45 = vpop.f32.mrb[8].mxu0 }
 0x360   :  { %v649_v51 = vadd.f32 %v648_v45, %v2595_v42  ;;  %v2057_v60 = vpop.f32.mrb[9].mxu0 }
 0x361   :  { %v651_v61 = vpop.f32.mrb[10].mxu0 }
 0x362   :  { %v652_v36 = vadd.f32 %v651_v61, %v2600_v52  ;;  %v2058_v62 = vpop.f32.mrb[11].mxu0  ;;  %v655_v2 = vsel %vm280_vm12, %v649_v51, -inf }
 0x363   :  { %656 = vmax.xlane.f32.xlu0 %v655_v2 }
 0x364   :  { %v658_v40 = vsel %vm280_vm12, %v652_v36, -inf }
 0x365   :  { %659 = vmax.xlane.f32.xlu1 %v658_v40 }
 0x3e0   :  { %v363_v3 = vpop.xlane.xlu1 %362 }
 0x3e1   :  { %v367_v48 = vsub.f32 %v355_v4, %v363_v3 }
 0x3e2   :  { %v366_v5 = vpop.xlane.xlu0 %365 }
 0x3e3   :  { %v369_v6 = vmul.f32 1.442695, %v367_v48  ;;  %v368_v8 = vsub.f32 %v358_v9, %v366_v5 }
 0x3e4   :  { %v286_v10 = vpop.xlane.xlu1 %285 }
 0x3e5   :  { %2231 = vpow2.f32 %v369_v6  ;;  %v371_v11 = vmul.f32 1.442695, %v368_v8  ;;  %v288_v15 = vsub.f32 %v277_v20, %v286_v10 }
 0x3e6   :  { %v283_v16 = vpop.xlane.xlu0 %282 }
 0x3e7   :  { %2233 = vpow2.f32 %v371_v11  ;;  %v291_v22 = vmul.f32 1.442695, %v288_v15  ;;  %v287_v24 = vsub.f32 %v274_v19, %v283_v16  ;;  %v2205_v15 = vld [vmem:[%s2935_s6] sm:$0xff]  }
 0x3e8   :  { %2066 = vmatpush3.bf16.msra.mxu0 %v2205_v15 }
 0x3e9   :  { %2235 = vpow2.f32 %v291_v22  ;;  %v289_v25 = vmul.f32 1.442695, %v287_v24  ;;  %2067 = vmatprep.subr.bf16.mxu0 %v2328_v14 }
 0x3ea   :  { %v534_v26 = vpop.xlane.xlu1 %533  ;;  %v531_v28 = vpop.xlane.xlu0 %530 }
 0x3eb   :  { %2237 = vpow2.f32 %v289_v25  ;;  %v536_v29 = vsub.f32 %v526_v31, %v534_v26  ;;  %v535_v30 = vsub.f32 %v523_v27, %v531_v28 }
 0x3ec   :  { %2068 = vmatpush3.bf16.msra.mxu0 %v2206_v44 }
 0x3ed   :  { %v539_v32 = vmul.f32 1.442695, %v536_v29  ;;  %v537_v4 = vmul.f32 1.442695, %v535_v30  ;;  %2073 = vmatprep.subr.bf16.mxu0 %v2328_v14 }
 0x3ef   :  { %v2232_v38 = vpop.eup %2231  ;;  %2239 = vpow2.f32 %v539_v32 }
 0x3f0   :  { %2241 = vpow2.f32 %v537_v4  ;;  %v657_v9 = vpop.xlane.xlu0 %656  ;;  %v373_v39 = vsel %vm280_vm12, %v2232_v38, 0.0 }
 0x3f1   :  { %v2234_v20 = vpop.eup %2233  ;;  %v661_v45 = vsub.f32 %v649_v51, %v657_v9  ;;  %374 = vadd.xlane.f32.xlu0 %v373_v39 }
 0x3f2   :  { %v660_v60 = vpop.xlane.xlu1 %659  ;;  %v376_v19 = vsel %vm280_vm12, %v2234_v20, 0.0 }
 0x3f3   :  { %v2236_v61 = vpop.eup %2235  ;;  %v663_v62 = vmul.f32 1.442695, %v661_v45  ;;  %v662_v2 = vsub.f32 %v652_v36, %v660_v60  ;;  %377 = vadd.xlane.f32.xlu1 %v376_v19 }
 0x3f4   :  { %v296_v40 = vsel %vm280_vm12, %v2236_v61, 0.0 }
 0x3f5   :  { %v2238_v31 = vpop.eup %2237  ;;  %2243 = vpow2.f32 %v663_v62  ;;  %v665_v27 = vmul.f32 1.442695, %v662_v2 }
 0x3f6   :  { %v293_v3 = vsel %vm280_vm12, %v2238_v31, 0.0 }
 0x3f7   :  { %2245 = vpow2.f32 %v665_v27  ;;  %297 = vadd.xlane.f32.xlu1 %v296_v40  ;;  %294 = vadd.xlane.f32.xlu0 %v293_v3 }
 0x3f9   :  { %v2240_v48 = vpop.eup %2239 }
 0x3fa   :  { %v2242_v51 = vpop.eup %2241  ;;  %v544_v5 = vsel %vm280_vm12, %v2240_v48, 0.0 }
 0x3fb   :  { %545 = vadd.xlane.f32.xlu1 %v544_v5  ;;  %v541_v6 = vsel %vm280_vm12, %v2242_v51, 0.0 }
 0x3fc   :  { %542 = vadd.xlane.f32.xlu0 %v541_v6 }
 0x3ff   :  { %v2244_v36 = vpop.eup %2243 }
 0x400   :  { %v667_v8 = vsel %vm280_vm12, %v2244_v36, 0.0 }
 0x401   :  { %v2246_v10 = vpop.eup %2245  ;;  %668 = vadd.xlane.f32.xlu0 %v667_v8 }
 0x402   :  { %v670_v11 = vsel %vm280_vm12, %v2246_v10, 0.0 }
 0x403   :  { %671 = vadd.xlane.f32.xlu1 %v670_v11 }
 0x47e   :  { %v375_v16 = vpop.xlane.xlu0 %374 }
 0x47f   :  { %2247 = vrcp.f32 %v375_v16 }
 0x480   :  { %v378_v22 = vpop.xlane.xlu1 %377 }
 0x481   :  { %2249 = vrcp.f32 %v378_v22 }
 0x484   :  { %v298_v24 = vpop.xlane.xlu1 %297  ;;  %v295_v25 = vpop.xlane.xlu0 %294 }
 0x485   :  { %2251 = vrcp.f32 %v298_v24 }
 0x486   :  { %2253 = vrcp.f32 %v295_v25 }
 0x488   :  { %v546_v4 = vpop.xlane.xlu1 %545 }
 0x489   :  { %v2248_v26 = vpop.eup %2247  ;;  %v543_v39 = vpop.xlane.xlu0 %542  ;;  %2255 = vrcp.f32 %v546_v4 }
 0x48a   :  { %v381_v29 = vmul.f32 %v2248_v26, %v2232_v38  ;;  %2257 = vrcp.f32 %v543_v39  ;;  %v1901_v39 = vld [vmem:[%s2937_s7] ss:$0 sm:$0xff] }
 0x48b   :  { %v2250_v28 = vpop.eup %2249 }
 0x48c   :  { %v382_v30 = vmul.f32 %v2250_v28, %v2234_v20 }
 0x48e   :  { %v383_v32 = vpack.c.bf16 %v382_v30, %v381_v29  ;;  %v669_v19 = vpop.xlane.xlu0 %668 }
 0x48f   :  { %v2252_v9 = vpop.eup %2251 }
 0x490   :  { %2032 = vmatmul.mubr.msk.bf16.vlgmr.msra.gmra.mrb[8].mxu1 %vm280_vm12, %v383_v32  ;;  %v2254_v45 = vpop.eup %2253  ;;  %v302_v38 = vmul.f32 %v2252_v9, %v2236_v61  ;;  %v672_v47 = vpop.xlane.xlu1 %671 }
 0x491   :  { %2036 = vmatpush3.bf16.msra.mxu1 %v229_v53  ;;  %2037 = vmatprep.mubr.msk.bf16.mxu1 %vm2332_vm11, %v2328_v14  ;;  %v301_v20 = vmul.f32 %v2254_v45, %v2238_v31  ;;  %2259 = vrcp.f32 %v672_v47  ;;  %v2210_v47 = vld [vmem:[%s2938_s9 + $0x8] sm:$0xff]  }
 0x492   :  { %2047 = vmatprep.subr.bf16.mxu1 %v2328_v14  ;;  %2261 = vrcp.f32 %v669_v19 }
 0x493   :  { %v303_v60 = vpack.c.bf16 %v302_v38, %v301_v20  ;;  %v2256_v41 = vpop.eup %2255 }
 0x494   :  { %v2258_v53 = vpop.eup %2257  ;;  %v550_v62 = vmul.f32 %v2256_v41, %v2240_v48  ;;  %v2209_v41 = vld [vmem:[%s2938_s9] sm:$0xff]  }
 0x495   :  { %v549_v61 = vmul.f32 %v2258_v53, %v2242_v51  ;;  %v2211_v53 = vld [vmem:[%s2938_s9 + $0x10] sm:$0xff]  }
 0x497   :  { %v551_v2 = vpack.c.bf16 %v550_v62, %v549_v61 }
 0x49b   :  { %v2260_v43 = vpop.eup %2259 }
 0x49c   :  { %2038 = vmatmul.mubr.msk.bf16.vlgmr.msra.gmra.mrb[8].mxu1 %vm280_vm12, %v303_v60  ;;  %v2262_v49 = vpop.eup %2261 }
 0x49d   :  { %2048 = vmatpush3.bf16.msra.mxu1 %v481_v54  ;;  %2049 = vmatprep.mubr.msk.bf16.mxu1 %vm2332_vm11, %v2328_v14  ;;  %v676_v54 = vmul.f32 %v2260_v43, %v2246_v10  ;;  %v675_v31 = vmul.f32 %v2262_v49, %v2244_v36 }
 0x49e   :  { %2059 = vmatprep.subr.bf16.mxu1 %v2328_v14 }
 0x49f   :  { %v677_v27 = vpack.c.bf16 %v676_v54, %v675_v31 }
 0x4a8   :  { %2050 = vmatmul.mubr.msk.bf16.vlgmr.msra.gmra.mrb[8].mxu1 %vm280_vm12, %v551_v2 }
 0x4a9   :  { %2060 = vmatpush3.bf16.msra.mxu1 %v607_v55  ;;  %2061 = vmatprep.mubr.msk.bf16.mxu1 %vm2332_vm11, %v2328_v14 }
 0x4aa   :  { %2081 = vmatprep.subr.bf16.mxu1 %v2328_v14 }
 0x4b4   :  { %2062 = vmatmul.mubr.msk.bf16.vlgmr.msra.gmra.mrb[8].mxu1 %vm280_vm12, %v677_v27 }
 0x4b5   :  { %2089 = vmatprep.mubr.msk.bf16.mxu1 %vm2332_vm11, %v2328_v14  ;;  %2082 = vmatpush3.bf16.msra.mxu1 %v2209_v41 }
 0x4b6   :  { %2083 = vmatprep.subr.bf16.mxu1 %v2328_v14 }
 0x4b9   :  { %2084 = vmatpush3.bf16.msra.mxu1 %v2210_v47  ;;  %v1913_v47 = vld [vmem:[%s2933_s4 + $0x1] ss:$0 sm:$0xff] }
 0x4ba   :  { %2085 = vmatprep.subr.bf16.mxu1 %v2328_v14 }
 0x4bd   :  { %2086 = vmatpush3.bf16.msra.mxu1 %v2211_v53 }
 0x4be   :  { %2087 = vmatprep.subr.bf16.mxu1 %v2328_v14 }
 0x587   :  { %v715_v50 = vpop.f32.mrb[8].mxu1 }
 0x588   :  { %v2063_v55 = vpop.f32.mrb[9].mxu1 }
 0x589   :  { %v718_v40 = vpop.f32.mrb[10].mxu1 }
 0x58a   :  { %v724_v3 = vpack.c.bf16 %v718_v40, %v715_v50  ;;  %v2064_v48 = vpop.f32.mrb[11].mxu1 }
 0x58c   :  { %2070 = vmatmul.mubr.msk.bf16.vlgmr.msra.gmra.mrb[12].mxu0 %vm72_vm0, %v724_v3 }
 0x58d   :  { %2077 = vmatprep.mubr.msk.bf16.mxu0 %vm2332_vm11, %v2328_v14 }
 0x65f   :  { %v778_v51 = vpop.f32.mrb[12].mxu0 }
 0x660   :  { %v2662_v5 = vadd.f32 %v778_v51, %v2396_v0  ;;  %v2071_v6 = vpop.f32.mrb[13].mxu0  ;;  %v2207_v0 = vld [vmem:[%s2936_s8] sm:$0xff]  }
 0x661   :  { %v781_v36 = vpop.f32.mrb[14].mxu0  ;;  %2074 = vmatpush3.bf16.msra.mxu0 %v2207_v0 }
 0x662   :  { %v2665_v8 = vadd.f32 %v781_v36, %v2401_v1  ;;  %v2072_v10 = vpop.f32.mrb[15].mxu0  ;;  %v788_v11 = vmul.f32 %v2662_v5, %v2662_v5  ;;  %v2208_v1 = vld [vmem:[%s2936_s8 + $0x8] sm:$0xff]   ;;  %2075 = vmatprep.subr.bf16.mxu0 %v2328_v14 }
 0x664   :  { %v790_v15 = vsel %vm72_vm0, %v788_v11, 0.0  ;;  %v789_v16 = vmul.f32 %v2665_v8, %v2665_v8 }
 0x665   :  { %791 = vadd.xlane.f32.xlu0 %v790_v15  ;;  %2076 = vmatpush3.bf16.msra.mxu0 %v2208_v1 }
 0x666   :  { %v793_v22 = vsel %vm72_vm0, %v789_v16, 0.0 }
 0x667   :  { %794 = vadd.xlane.f32.xlu1 %v793_v22 }
 0x6f2   :  { %v792_v24 = vpop.xlane.xlu0 %791 }
 0x6f3   :  { %v796_v25 = vmul.f32 0.03125, %v792_v24 }
 0x6f4   :  { %v795_v26 = vpop.xlane.xlu1 %794 }
 0x6f5   :  { %v798_v28 = vadd.f32 1e-05, %v796_v25  ;;  %v797_v29 = vmul.f32 0.03125, %v795_v26 }
 0x6f7   :  { %2263 = vrsqrt.f32 %v798_v28  ;;  %v799_v30 = vadd.f32 1e-05, %v797_v29  ;;  %v2216_v29 = vld [vmem:[%s2930_s5 + $0x30] ss:$8 sps:$4 sm:$0xff]  }
 0x6f9   :  { %2265 = vrsqrt.f32 %v799_v30  ;;  %v2218_v30 = vld [vmem:[%s2930_s5 + $0x34] ss:$8 sps:$4 sm:$0xff]  }
 0x701   :  { %v2264_v32 = vpop.eup %2263 }
 0x702   :  { %v802_v4 = vmul.f32 %v2264_v32, %v2662_v5 }
 0x703   :  { %v2266_v9 = vpop.eup %2265 }
 0x704   :  { %v803_v45 = vmul.f32 %v2266_v9, %v2665_v8  ;;  %v810_v38 = vmul.f32 %v1901_v39, %v802_v4 }
 0x706   :  { %v811_v20 = vmul.f32 %v1901_v39, %v803_v45 }
 0x708   :  { %v812_v60 = vpack.c.bf16 %v811_v20, %v810_v38 }
 0x70a   :  { %2078 = vmatmul.mubr.msk.bf16.vlgmr.msra.gmra.mrb[16].mxu0 %vm72_vm0, %v812_v60 }
 0x70b   :  { %1064 = vmatprep.mubr.bf16.mxu0 %v2327_v7  ;;  %v2212_v7 = vld [vmem:[%s2938_s9 + $0x18] sm:$0xff]  }
 0x70c   :  { %2088 = vmatpush3.bf16.msra.mxu1 %v2212_v7 }
 0x70d   :  { %2099 = vmatprep.subr.bf16.mxu1 %v2328_v14 }
 0x7dd   :  { %v866_v19 = vpop.f32.mrb[16].mxu0 }
 0x7de   :  { %889 = vrot.lane.b32.xlu0 %v866_v19, %s2330_s14  ;;  %v2079_v62 = vpop.f32.mrb[17].mxu0  ;;  %v1905_v43 = vmul.f32 -1.442695, %v866_v19 }
 0x7df   :  { %v869_v61 = vpop.f32.mrb[18].mxu0 }
 0x7e0   :  { %891 = vrot.lane.b32.xlu1 %v869_v61, %s2330_s14  ;;  %v2080_v2 = vpop.f32.mrb[19].mxu0  ;;  %v1906_v49 = vmul.f32 -1.442695, %v869_v61  ;;  %2267 = vpow2.f32 %v1905_v43 }
 0x7e2   :  { %2269 = vpow2.f32 %v1906_v49 }
 0x7ea   :  { %v2268_v54 = vpop.eup %2267 }
 0x7eb   :  { %v879_v27 = vadd.f32 1.0, %v2268_v54 }
 0x7ec   :  { %v2270_v31 = vpop.eup %2269 }
 0x7ed   :  { %v880_v44 = vadd.f32 1.0, %v2270_v31  ;;  %2271 = vrcp.f32 %v879_v27 }
 0x7ef   :  { %2273 = vrcp.f32 %v880_v44 }
 0x7f7   :  { %v2272_v50 = vpop.eup %2271 }
 0x7f8   :  { %v885_v3 = vmul.f32 %v2272_v50, %v866_v19 }
 0x7f9   :  { %v2274_v55 = vpop.eup %2273 }
 0x7fa   :  { %v886_v48 = vmul.f32 %v2274_v55, %v869_v61 }
 0x850   :  { %v890_v40 = vpop.permute.xlu0 %889 }
 0x851   :  { %v895_v6 = vmul.f32 %v890_v40, %v885_v3 }
 0x852   :  { %v892_v51 = vpop.permute.xlu1 %891 }
 0x853   :  { %v896_v36 = vmul.f32 %v892_v51, %v886_v48 }
 0x855   :  { %v897_v10 = vpack.c.bf16 %v896_v36, %v895_v6 }
 0x857   :  { %2090 = vmatmul.mubr.msk.bf16.vlgmr.msra.gmra.mrb[12].mxu1 %vm930_vm13, %v897_v10 }
 0x858   :  { %2101 = vmatprep.mubr.msk.bf16.mxu1 %vm2332_vm11, %v2328_v14 }
 0x92a   :  { %v968_v11 = vpop.f32.mrb[12].mxu1 }
 0x92b   :  { %v2709_v15 = vadd.f32 %v968_v11, %v2662_v5  ;;  %v2091_v16 = vpop.f32.mrb[13].mxu1  ;;  %v2215_v5 = vld [vmem:[%s2930_s5 + $0x24] ss:$8 sps:$4 sm:$0xff]  }
 0x92c   :  { %v971_v22 = vpop.f32.mrb[14].mxu1  ;;  %1032 = vmatprep.subr.bf16.mxu0 %v2215_v5 }
 0x92d   :  { %v2712_v0 = vadd.f32 %v971_v22, %v2665_v8  ;;  %v2092_v1 = vpop.f32.mrb[15].mxu1  ;;  %v979_v24 = vmul.f32 %v2709_v15, %v2709_v15  ;;  %v2213_v8 = vld [vmem:[%s2930_s5 + $0x20] ss:$8 sps:$4 sm:$0xff]  }
 0x92e   :  { %1033 = vmatpush1.bf16.msra.mxu0 %v2213_v8 }
 0x92f   :  { %v981_v25 = vsel %vm72_vm0, %v979_v24, 0.0  ;;  %v980_v26 = vmul.f32 %v2712_v0, %v2712_v0  ;;  %1034 = vmatprep.subr.bf16.mxu0 %v2218_v30 }
 0x930   :  { %982 = vadd.xlane.f32.xlu1 %v981_v25 }
 0x931   :  { %v984_v28 = vsel %vm72_vm0, %v980_v26, 0.0 }
 0x932   :  { %985 = vadd.xlane.f32.xlu0 %v984_v28  ;;  %1035 = vmatpush1.bf16.msra.mxu0 %v2216_v29 }
 0x933   :  { %2093 = vmatprep.subr.bf16.mxu0 %v2328_v14 }
 0x9bd   :  { %v983_v32 = vpop.xlane.xlu1 %982 }
 0x9be   :  { %v987_v4 = vmul.f32 0.03125, %v983_v32 }
 0x9bf   :  { %v986_v9 = vpop.xlane.xlu0 %985 }
 0x9c0   :  { %v989_v39 = vadd.f32 1e-05, %v987_v4  ;;  %v988_v45 = vmul.f32 0.03125, %v986_v9 }
 0x9c2   :  { %2275 = vrsqrt.f32 %v989_v39  ;;  %v990_v38 = vadd.f32 1e-05, %v988_v45 }
 0x9c4   :  { %2277 = vrsqrt.f32 %v990_v38 }
 0x9cc   :  { %v2276_v20 = vpop.eup %2275 }
 0x9cd   :  { %v993_v60 = vmul.f32 %v2276_v20, %v2709_v15 }
 0x9ce   :  { %v2278_v41 = vpop.eup %2277 }
 0x9cf   :  { %v994_v53 = vmul.f32 %v2278_v41, %v2712_v0  ;;  %v1001_v7 = vmul.f32 %v1913_v47, %v993_v60 }
 0x9d1   :  { %v1002_v19 = vmul.f32 %v1913_v47, %v994_v53 }
 0x9d3   :  { %v1003_v62 = vpack.c.bf16 %v1002_v19, %v1001_v7 }
 0x9d5   :  { %1922 = vmatmul.mubr.msk.bf16.vlgmr.msra.gmra.mrb[20].mxu0 %vm72_vm0, %v1003_v62 }
 0x9d6   :  { %2095 = vmatprep.mubr.msk.bf16.mxu0 %vm2332_vm11, %v2328_v14 }
 0xaa8   :  { %v1066_v61 = vpop.f32.mrb[20].mxu0 }
 0xaa9   :  { %v1068_v2 = vpop.f32.mrb[21].mxu0  ;;  %v1091_v43 = vmul.f32 %v1066_v61, %v2470_v35  ;;  %v1077_v51 = vmul.f32 %v1066_v61, %v2546_v12 }
 0xaaa   :  { %v2743_v49 = vmul.f32 %v2461_v33, %v1068_v2  ;;  %v1070_v54 = vpop.f32.mrb[22].mxu0  ;;  %v1188_v31 = vmul.f32 %v2450_v18, %v1068_v2  ;;  %v2747_v27 = vmul.f32 %v2475_v37, %v1068_v2  ;;  %v2750_v44 = vmul.f32 %v2466_v34, %v1068_v2 }
 0xaab   :  { %1095 = vrot.lane.b32.xlu0 %v1091_v43, %s2329_s13  ;;  %v1072_v50 = vpop.f32.mrb[23].mxu0  ;;  %v1092_v55 = vmul.f32 %v1070_v54, %v2494_v46  ;;  %v1090_v10 = vmul.f32 %v1070_v54, %v2522_v56 }
 0xaac   :  { %v2755_v40 = vmul.f32 %v2461_v33, %v1072_v50  ;;  %v1189_v35 = vmul.f32 %v2450_v18, %v1072_v50  ;;  %v2759_v3 = vmul.f32 %v2475_v37, %v1072_v50  ;;  %v2762_v48 = vmul.f32 %v2466_v34, %v1072_v50 }
 0xaad   :  { %1097 = vrot.lane.b32.xlu1 %v1092_v55, %s2329_s13  ;;  %v1089_v37 = vmul.f32 %v1066_v61, %v2524_v57 }
 0xaae   :  { %v1190_v6 = vpack.c.bf16 %v1189_v35, %v1188_v31  ;;  %v1111_v36 = vpack.c.bf16 %v2755_v40, %v2743_v49  ;;  %v1354_v33 = vpack.c.bf16 %v2759_v3, %v2747_v27  ;;  %v1476_v18 = vpack.c.bf16 %v2762_v48, %v2750_v44  ;;  %v2220_v44 = vld [vmem:[%s2935_s6 + $0x18] sm:$0xff]  }
 0xaaf   :  { %1081 = vrot.lane.b32.xlu0 %v1077_v51, %s2329_s13 }
 0xb1d   :  { %v1096_v34 = vpop.permute.xlu0 %1095 }
 0xb1e   :  { %v1101_v46 = vadd.f32 %v1096_v34, %v1089_v37 }
 0xb1f   :  { %v1098_v11 = vpop.permute.xlu1 %1097 }
 0xb20   :  { %v1102_v12 = vadd.f32 %v1098_v11, %v1090_v10  ;;  %v1185_v16 = vmul.f32 %v1101_v46, %v2526_v58  ;;  %v1106_v22 = vmul.f32 %v1101_v46, %v2528_v59  ;;  %v1471_v25 = vmul.f32 %v1101_v46, %v2532_v63 }
 0xb21   :  { %v1349_v57 = vmul.f32 %v1101_v46, %v2558_v23 }
 0xb22   :  { %v1186_v1 = vmul.f32 %v1102_v12, %v2526_v58  ;;  %v1107_v24 = vmul.f32 %v1102_v12, %v2528_v59  ;;  %v1472_v26 = vmul.f32 %v1102_v12, %v2532_v63  ;;  %v1350_v28 = vmul.f32 %v1102_v12, %v2558_v23  ;;  %v1082_v59 = vpop.permute.xlu0 %1081 }
 0xb23   :  { %v1078_v58 = vmul.f32 %v1070_v54, %v2552_v21  ;;  %v1075_v23 = vmul.f32 %v1066_v61, %v2430_v13  ;;  %v1076_v21 = vmul.f32 %v1070_v54, %v2445_v17 }
 0xb24   :  { %v1187_v5 = vpack.c.bf16 %v1186_v1, %v1185_v16  ;;  %v1108_v56 = vpack.c.bf16 %v1107_v24, %v1106_v22  ;;  %v1473_v8 = vpack.c.bf16 %v1472_v26, %v1471_v25  ;;  %v1351_v29 = vpack.c.bf16 %v1350_v28, %v1349_v57 }
 0xb25   :  { %v1087_v9 = vadd.f32 %v1082_v59, %v1075_v23 }
 0xb26   :  { %1192 = vrot.lane.b32.xlu1 %v1187_v5, %s2330_s14  ;;  %1113 = vrot.lane.b32.xlu0 %v1108_v56, %s2330_s14 }
 0xb27   :  { %v1103_v38 = vmul.f32 0.35355338, %v1087_v9 }
 0xb2a   :  { %1478 = vrot.lane.b32.xlu0 %v1473_v8, %s2330_s14  ;;  %1083 = vrot.lane.b32.xlu1 %v1078_v58, %s2329_s13 }
 0xb2e   :  { %1356 = vrot.lane.b32.xlu1 %v1351_v29, %s2330_s14 }
 0xb98   :  { %v1193_v63 = vpop.permute.xlu1 %1192  ;;  %v1114_v30 = vpop.permute.xlu0 %1113 }
 0xb99   :  { %v1195_v32 = vsel %vm72_vm0, %v1193_v63, 0  ;;  %v1119_v4 = vsel %vm72_vm0, %v1114_v30, 0 }
 0xb9a   :  { %2094 = vmatpush3.bf16.xpose.msra.mxu0 %v1119_v4  ;;  %2100 = vmatpush3.bf16.xpose.msra.mxu1 %v1195_v32 }
 0xb9b   :  { %2105 = vmatprep.subr.bf16.mxu0 %v2328_v14  ;;  %2117 = vmatprep.subr.bf16.mxu1 %v2328_v14 }
 0xb9c   :  { %v1084_v39 = vpop.permute.xlu1 %1083  ;;  %v1479_v17 = vpop.permute.xlu0 %1478 }
 0xb9d   :  { %v1088_v45 = vadd.f32 %v1084_v39, %v1076_v21  ;;  %v1481_v47 = vsel %vm72_vm0, %v1479_v17, 0 }
 0xb9f   :  { %v1104_v20 = vmul.f32 0.35355338, %v1088_v45 }
 0xba0   :  { %v1357_v60 = vpop.permute.xlu1 %1356 }
 0xba1   :  { %v1105_v41 = vpack.c.bf16 %v1104_v20, %v1103_v38  ;;  %v1359_v13 = vsel %vm72_vm0, %v1357_v60, 0 }
 0xba3   :  { %2096 = vmatmul.mubr.msk.bf16.vlgmr.msra.gmra.mrb[24].mxu0 %vm72_vm0, %v1105_v41  ;;  %2102 = vmatmul.mubr.msk.bf16.vlgmr.msra.gmra.mrb[16].mxu1 %vm72_vm0, %v1105_v41 }
 0xba4   :  { %2106 = vmatpush3.bf16.msra.mxu0 %v1190_v6  ;;  %2118 = vmatpush3.bf16.xpose.msra.mxu1 %v1359_v13 }
 0xba5   :  { %2119 = vmatprep.mubr.msk.bf16.mxu1 %vm2332_vm11, %v2328_v14  ;;  %2129 = vmatprep.subr.bf16.mxu1 %v2328_v14 }
 0xba6   :  { %2107 = vmatprep.mubr.msk.bf16.mxu0 %vm2332_vm11, %v2328_v14  ;;  %2111 = vmatprep.subr.bf16.mxu0 %v2328_v14 }
 0xbab   :  { %2120 = vmatmul.mubr.msk.bf16.vlgmr.msra.gmra.mrb[20].mxu1 %vm72_vm0, %v1105_v41 }
 0xbac   :  { %2130 = vmatpush3.bf16.xpose.msra.mxu1 %v1481_v47  ;;  %2131 = vmatprep.mubr.msk.bf16.mxu1 %vm2332_vm11, %v2328_v14 }
 0xbad   :  { %2141 = vmatprep.subr.bf16.mxu1 %v2328_v14 }
 0xbb3   :  { %2132 = vmatmul.mubr.msk.bf16.vlgmr.msra.gmra.mrb[24].mxu1 %vm72_vm0, %v1105_v41 }
 0xbb4   :  { %2145 = vmatprep.mubr.msk.bf16.mxu1 %vm2332_vm11, %v2328_v14 }
 0xc76   :  { %v1155_v53 = vpop.f32.mrb[24].mxu0  ;;  %v1231_v7 = vpop.f32.mrb[16].mxu1 }
 0xc77   :  { %v1232_v19 = vadd.f32 %v1231_v7, %v2595_v42  ;;  %v2097_v62 = vpop.f32.mrb[25].mxu0  ;;  %v2103_v61 = vpop.f32.mrb[17].mxu1  ;;  %v1156_v51 = vadd.f32 %v1155_v53, %v2595_v42 }
 0xc78   :  { %v1158_v2 = vpop.f32.mrb[26].mxu0  ;;  %v1234_v43 = vpop.f32.mrb[18].mxu1 }
 0xc79   :  { %v1159_v54 = vadd.f32 %v1158_v2, %v2600_v52  ;;  %v1235_v31 = vadd.f32 %v1234_v43, %v2600_v52  ;;  %v2098_v50 = vpop.f32.mrb[27].mxu0  ;;  %v2104_v55 = vpop.f32.mrb[19].mxu1  ;;  %v1238_v35 = vsel %vm280_vm12, %v1232_v19, -inf  ;;  %v1162_v11 = vsel %vm280_vm12, %v1156_v51, -inf }
 0xc7a   :  { %1239 = vmax.xlane.f32.xlu1 %v1238_v35 }
 0xc7b   :  { %v1241_v6 = vsel %vm280_vm12, %v1235_v31, -inf  ;;  %v1165_v37 = vsel %vm280_vm12, %v1159_v54, -inf }
 0xc7c   :  { %1242 = vmax.xlane.f32.xlu0 %v1241_v6 }
 0xc7e   :  { %1166 = vmax.xlane.f32.xlu1 %v1165_v37  ;;  %v1395_v34 = vpop.f32.mrb[20].mxu1 }
 0xc7f   :  { %v1396_v46 = vadd.f32 %v1395_v34, %v2595_v42  ;;  %v2121_v10 = vpop.f32.mrb[21].mxu1 }
 0xc80   :  { %1163 = vmax.xlane.f32.xlu0 %v1162_v11  ;;  %v1398_v12 = vpop.f32.mrb[22].mxu1 }
 0xc81   :  { %v1399_v16 = vadd.f32 %v1398_v12, %v2600_v52  ;;  %v2122_v22 = vpop.f32.mrb[23].mxu1  ;;  %v1402_v1 = vsel %vm280_vm12, %v1396_v46, -inf }
 0xc83   :  { %v1405_v24 = vsel %vm280_vm12, %v1399_v16, -inf }
 0xc84   :  { %1403 = vmax.xlane.f32.xlu0 %v1402_v1  ;;  %1406 = vmax.xlane.f32.xlu1 %v1405_v24 }
 0xc86   :  { %v1517_v25 = vpop.f32.mrb[24].mxu1 }
 0xc87   :  { %v1518_v26 = vadd.f32 %v1517_v25, %v2595_v42  ;;  %v2133_v57 = vpop.f32.mrb[25].mxu1 }
 0xc88   :  { %v1520_v28 = vpop.f32.mrb[26].mxu1 }
 0xc89   :  { %v1521_v5 = vadd.f32 %v1520_v28, %v2600_v52  ;;  %v2134_v56 = vpop.f32.mrb[27].mxu1  ;;  %v1524_v8 = vsel %vm280_vm12, %v1518_v26, -inf }
 0xc8a   :  { %1525 = vmax.xlane.f32.xlu0 %v1524_v8 }
 0xc8b   :  { %v1527_v29 = vsel %vm280_vm12, %v1521_v5, -inf }
 0xc8c   :  { %1528 = vmax.xlane.f32.xlu1 %v1527_v29 }
 0xd07   :  { %v1240_v58 = vpop.xlane.xlu1 %1239 }
 0xd08   :  { %v1244_v59 = vsub.f32 %v1232_v19, %v1240_v58 }
 0xd09   :  { %v1243_v63 = vpop.xlane.xlu0 %1242 }
 0xd0a   :  { %v1246_v30 = vmul.f32 1.442695, %v1244_v59  ;;  %v1245_v23 = vsub.f32 %v1235_v31, %v1243_v63 }
 0xd0b   :  { %v1167_v32 = vpop.xlane.xlu1 %1166 }
 0xd0c   :  { %2279 = vpow2.f32 %v1246_v30  ;;  %v1248_v4 = vmul.f32 1.442695, %v1245_v23  ;;  %v1169_v42 = vsub.f32 %v1159_v54, %v1167_v32 }
 0xd0d   :  { %v1164_v9 = vpop.xlane.xlu0 %1163 }
 0xd0e   :  { %2281 = vpow2.f32 %v1248_v4  ;;  %v1172_v21 = vmul.f32 1.442695, %v1169_v42  ;;  %v1168_v52 = vsub.f32 %v1156_v51, %v1164_v9 }
 0xd10   :  { %2283 = vpow2.f32 %v1172_v21  ;;  %v1170_v39 = vmul.f32 1.442695, %v1168_v52 }
 0xd11   :  { %v1404_v45 = vpop.xlane.xlu0 %1403  ;;  %v1407_v38 = vpop.xlane.xlu1 %1406 }
 0xd12   :  { %2285 = vpow2.f32 %v1170_v39  ;;  %v1408_v20 = vsub.f32 %v1396_v46, %v1404_v45  ;;  %v1409_v60 = vsub.f32 %v1399_v16, %v1407_v38  ;;  %v2219_v16 = vld [vmem:[%s2935_s6 + $0x10] sm:$0xff]  }
 0xd13   :  { %2142 = vmatpush3.bf16.msra.mxu1 %v2219_v16  ;;  %v2225_v16 = vld [vmem:[%s2938_s9 + $0x30] sm:$0xff]  }
 0xd14   :  { %v1410_v41 = vmul.f32 1.442695, %v1408_v20  ;;  %v1412_v13 = vmul.f32 1.442695, %v1409_v60  ;;  %2143 = vmatprep.subr.bf16.mxu1 %v2328_v14 }
 0xd16   :  { %v2280_v17 = vpop.eup %2279  ;;  %2287 = vpow2.f32 %v1410_v41 }
 0xd17   :  { %2289 = vpow2.f32 %v1412_v13  ;;  %v1526_v47 = vpop.xlane.xlu0 %1525  ;;  %v1250_v53 = vsel %vm280_vm12, %v2280_v17, 0.0  ;;  %2144 = vmatpush3.bf16.msra.mxu1 %v2220_v44 }
 0xd18   :  { %v2282_v7 = vpop.eup %2281  ;;  %v1530_v19 = vsub.f32 %v1518_v26, %v1526_v47  ;;  %1251 = vadd.xlane.f32.xlu0 %v1250_v53  ;;  %2149 = vmatprep.subr.bf16.mxu1 %v2328_v14 }
 0xd19   :  { %v1529_v62 = vpop.xlane.xlu1 %1528  ;;  %v1253_v61 = vsel %vm280_vm12, %v2282_v7, 0.0 }
 0xd1a   :  { %v2284_v2 = vpop.eup %2283  ;;  %v1532_v43 = vmul.f32 1.442695, %v1530_v19  ;;  %v1531_v54 = vsub.f32 %v1521_v5, %v1529_v62  ;;  %1254 = vadd.xlane.f32.xlu1 %v1253_v61 }
 0xd1b   :  { %v1177_v35 = vsel %vm280_vm12, %v2284_v2, 0.0 }
 0xd1c   :  { %v2286_v31 = vpop.eup %2285  ;;  %2291 = vpow2.f32 %v1532_v43  ;;  %v1534_v50 = vmul.f32 1.442695, %v1531_v54 }
 0xd1d   :  { %v1174_v55 = vsel %vm280_vm12, %v2286_v31, 0.0 }
 0xd1e   :  { %2293 = vpow2.f32 %v1534_v50  ;;  %1175 = vadd.xlane.f32.xlu0 %v1174_v55  ;;  %1178 = vadd.xlane.f32.xlu1 %v1177_v35 }
 0xd20   :  { %v2288_v51 = vpop.eup %2287 }
 0xd21   :  { %v2290_v6 = vpop.eup %2289  ;;  %v1414_v37 = vsel %vm280_vm12, %v2288_v51, 0.0 }
 0xd22   :  { %1415 = vadd.xlane.f32.xlu0 %v1414_v37  ;;  %v1417_v34 = vsel %vm280_vm12, %v2290_v6, 0.0 }
 0xd23   :  { %1418 = vadd.xlane.f32.xlu1 %v1417_v34 }
 0xd26   :  { %v2292_v46 = vpop.eup %2291 }
 0xd27   :  { %v1536_v10 = vsel %vm280_vm12, %v2292_v46, 0.0 }
 0xd28   :  { %v2294_v11 = vpop.eup %2293  ;;  %1537 = vadd.xlane.f32.xlu0 %v1536_v10 }
 0xd29   :  { %v1539_v12 = vsel %vm280_vm12, %v2294_v11, 0.0 }
 0xd2a   :  { %1540 = vadd.xlane.f32.xlu1 %v1539_v12  ;;  %v2224_v12 = vld [vmem:[%s2938_s9 + $0x28] sm:$0xff]  }
 0xda5   :  { %v1252_v22 = vpop.xlane.xlu0 %1251 }
 0xda6   :  { %2295 = vrcp.f32 %v1252_v22  ;;  %v2226_v22 = vld [vmem:[%s2938_s9 + $0x38] sm:$0xff]  }
 0xda7   :  { %v1255_v1 = vpop.xlane.xlu1 %1254 }
 0xda8   :  { %2297 = vrcp.f32 %v1255_v1 }
 0xdab   :  { %v1176_v24 = vpop.xlane.xlu0 %1175  ;;  %v1179_v25 = vpop.xlane.xlu1 %1178 }
 0xdac   :  { %2299 = vrcp.f32 %v1176_v24 }
 0xdad   :  { %2301 = vrcp.f32 %v1179_v25 }
 0xdaf   :  { %v1416_v8 = vpop.xlane.xlu0 %1415 }
 0xdb0   :  { %v2296_v26 = vpop.eup %2295  ;;  %v1419_v58 = vpop.xlane.xlu1 %1418  ;;  %2303 = vrcp.f32 %v1416_v8 }
 0xdb1   :  { %v1258_v28 = vmul.f32 %v2296_v26, %v2280_v17  ;;  %2305 = vrcp.f32 %v1419_v58 }
 0xdb2   :  { %v2298_v57 = vpop.eup %2297 }
 0xdb3   :  { %v1259_v5 = vmul.f32 %v2298_v57, %v2282_v7 }
 0xdb5   :  { %v1260_v56 = vpack.c.bf16 %v1259_v5, %v1258_v28  ;;  %v1538_v32 = vpop.xlane.xlu0 %1537 }
 0xdb6   :  { %v2300_v29 = vpop.eup %2299 }
 0xdb7   :  { %2108 = vmatmul.mubr.msk.bf16.vlgmr.msra.gmra.mrb[28].mxu0 %vm280_vm12, %v1260_v56  ;;  %v2302_v59 = vpop.eup %2301  ;;  %v1182_v63 = vmul.f32 %v2300_v29, %v2286_v31  ;;  %v1541_v40 = vpop.xlane.xlu1 %1540 }
 0xdb8   :  { %2112 = vmatpush3.bf16.msra.mxu0 %v1111_v36  ;;  %2113 = vmatprep.mubr.msk.bf16.mxu0 %vm2332_vm11, %v2328_v14  ;;  %v1183_v30 = vmul.f32 %v2302_v59, %v2284_v2  ;;  %2307 = vrcp.f32 %v1541_v40 }
 0xdb9   :  { %2123 = vmatprep.subr.bf16.mxu0 %v2328_v14  ;;  %2309 = vrcp.f32 %v1538_v32 }
 0xdba   :  { %v1184_v23 = vpack.c.bf16 %v1183_v30, %v1182_v63  ;;  %v2304_v49 = vpop.eup %2303 }
 0xdbb   :  { %v2306_v36 = vpop.eup %2305  ;;  %v1422_v4 = vmul.f32 %v2304_v49, %v2288_v51 }
 0xdbc   :  { %v1423_v42 = vmul.f32 %v2306_v36, %v2290_v6  ;;  %v1939_v6 = vld [vmem:[%s2937_s7 + $0x1] ss:$0 sm:$0xff] }
 0xdbe   :  { %v1424_v9 = vpack.c.bf16 %v1423_v42, %v1422_v4 }
 0xdc2   :  { %v2308_v27 = vpop.eup %2307 }
 0xdc3   :  { %2114 = vmatmul.mubr.msk.bf16.vlgmr.msra.gmra.mrb[28].mxu0 %vm280_vm12, %v1184_v23  ;;  %v2310_v3 = vpop.eup %2309 }
 0xdc4   :  { %2124 = vmatpush3.bf16.msra.mxu0 %v1354_v33  ;;  %2125 = vmatprep.mubr.msk.bf16.mxu0 %vm2332_vm11, %v2328_v14  ;;  %v1545_v33 = vmul.f32 %v2308_v27, %v2294_v11  ;;  %v1544_v21 = vmul.f32 %v2310_v3, %v2292_v46  ;;  %v2223_v11 = vld [vmem:[%s2938_s9 + $0x20] sm:$0xff]  }
 0xdc5   :  { %2135 = vmatprep.subr.bf16.mxu0 %v2328_v14 }
 0xdc6   :  { %v1546_v52 = vpack.c.bf16 %v1545_v33, %v1544_v21 }
 0xdcf   :  { %2126 = vmatmul.mubr.msk.bf16.vlgmr.msra.gmra.mrb[28].mxu0 %vm280_vm12, %v1424_v9 }
 0xdd0   :  { %2136 = vmatpush3.bf16.msra.mxu0 %v1476_v18  ;;  %2137 = vmatprep.mubr.msk.bf16.mxu0 %vm2332_vm11, %v2328_v14 }
 0xdd1   :  { %2157 = vmatprep.subr.bf16.mxu0 %v2328_v14 }
 0xddb   :  { %2138 = vmatmul.mubr.msk.bf16.vlgmr.msra.gmra.mrb[28].mxu0 %vm280_vm12, %v1546_v52 }
 0xddc   :  { %2165 = vmatprep.mubr.msk.bf16.mxu0 %vm2332_vm11, %v2328_v14  ;;  %2158 = vmatpush3.bf16.msra.mxu0 %v2223_v11 }
 0xddd   :  { %2159 = vmatprep.subr.bf16.mxu0 %v2328_v14 }
 0xde0   :  { %2160 = vmatpush3.bf16.msra.mxu0 %v2224_v12 }
 0xde1   :  { %2161 = vmatprep.subr.bf16.mxu0 %v2328_v14 }
 0xde4   :  { %2162 = vmatpush3.bf16.msra.mxu0 %v2225_v16 }
 0xde5   :  { %2163 = vmatprep.subr.bf16.mxu0 %v2328_v14 }
 0xde8   :  { %2164 = vmatpush3.bf16.msra.mxu0 %v2226_v22 }
 0xeae   :  { %v1584_v48 = vpop.f32.mrb[28].mxu0 }
 0xeaf   :  { %v2139_v18 = vpop.f32.mrb[29].mxu0 }
 0xeb0   :  { %v1587_v39 = vpop.f32.mrb[30].mxu0 }
 0xeb1   :  { %v1593_v45 = vpack.c.bf16 %v1587_v39, %v1584_v48  ;;  %v2140_v38 = vpop.f32.mrb[31].mxu0 }
 0xeb3   :  { %2146 = vmatmul.mubr.msk.bf16.vlgmr.msra.gmra.mrb[28].mxu1 %vm72_vm0, %v1593_v45 }
 0xeb4   :  { %2153 = vmatprep.mubr.msk.bf16.mxu1 %vm2332_vm11, %v2328_v14 }
 0xf86   :  { %v1648_v20 = vpop.f32.mrb[28].mxu1 }
 0xf87   :  { %v2872_v60 = vadd.f32 %v1648_v20, %v2709_v15  ;;  %v2147_v41 = vpop.f32.mrb[29].mxu1  ;;  %v2221_v15 = vld [vmem:[%s2936_s8 + $0x10] sm:$0xff]  }
 0xf88   :  { %v1651_v13 = vpop.f32.mrb[30].mxu1  ;;  %2150 = vmatpush3.bf16.msra.mxu1 %v2221_v15  ;;  %v1962_v41 = vld [vmem:[%s2939_s10] ss:$0 sm:$0xff] }
 0xf89   :  { %v2875_v17 = vadd.f32 %v1651_v13, %v2712_v0  ;;  %v2148_v47 = vpop.f32.mrb[31].mxu1  ;;  %v1659_v53 = vmul.f32 %v2872_v60, %v2872_v60  ;;  %v2222_v0 = vld [vmem:[%s2936_s8 + $0x18] sm:$0xff]   ;;  %2151 = vmatprep.subr.bf16.mxu1 %v2328_v14 }
 0xf8b   :  { %v1661_v7 = vsel %vm72_vm0, %v1659_v53, 0.0  ;;  %v1660_v19 = vmul.f32 %v2875_v17, %v2875_v17 }
 0xf8c   :  { %1662 = vadd.xlane.f32.xlu0 %v1661_v7  ;;  %2152 = vmatpush3.bf16.msra.mxu1 %v2222_v0 }
 0xf8d   :  { %v1664_v62 = vsel %vm72_vm0, %v1660_v19, 0.0 }
 0xf8e   :  { %1665 = vadd.xlane.f32.xlu1 %v1664_v62 }
0x1019   :  { %v1663_v61 = vpop.xlane.xlu0 %1662 }
0x101a   :  { %v1667_v2 = vmul.f32 0.03125, %v1663_v61 }
0x101b   :  { %v1666_v43 = vpop.xlane.xlu1 %1665 }
0x101c   :  { %v1669_v54 = vadd.f32 1e-05, %v1667_v2  ;;  %v1668_v31 = vmul.f32 0.03125, %v1666_v43 }
0x101e   :  { %2311 = vrsqrt.f32 %v1669_v54  ;;  %v1670_v50 = vadd.f32 1e-05, %v1668_v31 }
0x1020   :  { %2313 = vrsqrt.f32 %v1670_v50 }
0x1028   :  { %v2312_v55 = vpop.eup %2311 }
0x1029   :  { %v1673_v35 = vmul.f32 %v2312_v55, %v2872_v60 }
0x102a   :  { %v2314_v51 = vpop.eup %2313 }
0x102b   :  { %v1674_v37 = vmul.f32 %v2314_v51, %v2875_v17  ;;  %v1681_v34 = vmul.f32 %v1939_v6, %v1673_v35 }
0x102d   :  { %v1682_v46 = vmul.f32 %v1939_v6, %v1674_v37 }
0x102f   :  { %v1683_v10 = vpack.c.bf16 %v1682_v46, %v1681_v34 }
0x1031   :  { %2154 = vmatmul.mubr.msk.bf16.vlgmr.msra.gmra.mrb[32].mxu1 %vm72_vm0, %v1683_v10 }
0x1104   :  { %v1738_v1 = vpop.f32.mrb[32].mxu1 }
0x1105   :  { %1761 = vrot.lane.b32.xlu0 %v1738_v1, %s2330_s14  ;;  %v2155_v24 = vpop.f32.mrb[33].mxu1  ;;  %v1947_v57 = vmul.f32 -1.442695, %v1738_v1 }
0x1106   :  { %v1741_v25 = vpop.f32.mrb[34].mxu1 }
0x1107   :  { %1763 = vrot.lane.b32.xlu1 %v1741_v25, %s2330_s14  ;;  %v2156_v26 = vpop.f32.mrb[35].mxu1  ;;  %v1948_v28 = vmul.f32 -1.442695, %v1741_v25  ;;  %2315 = vpow2.f32 %v1947_v57 }
0x1109   :  { %2317 = vpow2.f32 %v1948_v28 }
0x1111   :  { %v2316_v5 = vpop.eup %2315 }
0x1112   :  { %v1751_v14 = vadd.f32 1.0, %v2316_v5 }
0x1113   :  { %v2318_v56 = vpop.eup %2317 }
0x1114   :  { %v1752_v8 = vadd.f32 1.0, %v2318_v56  ;;  %2319 = vrcp.f32 %v1751_v14 }
0x1116   :  { %2321 = vrcp.f32 %v1752_v8 }
0x111e   :  { %v2320_v29 = vpop.eup %2319 }
0x111f   :  { %v1757_v63 = vmul.f32 %v2320_v29, %v1738_v1 }
0x1120   :  { %v2322_v58 = vpop.eup %2321 }
0x1121   :  { %v1758_v30 = vmul.f32 %v2322_v58, %v1741_v25 }
0x1177   :  { %v1762_v59 = vpop.permute.xlu0 %1761 }
0x1178   :  { %v1767_v49 = vmul.f32 %v1762_v59, %v1757_v63 }
0x1179   :  { %v1764_v23 = vpop.permute.xlu1 %1763 }
0x117a   :  { %v1768_v40 = vmul.f32 %v1764_v23, %v1758_v30 }
0x117c   :  { %v1769_v36 = vpack.c.bf16 %v1768_v40, %v1767_v49 }
0x117e   :  { %2166 = vmatmul.mubr.msk.bf16.vlgmr.msra.gmra.mrb[32].mxu0 %vm930_vm13, %v1769_v36 }
0x1251   :  { %v1840_v32 = vpop.f32.mrb[32].mxu0 }
0x1252   :  { %v1847_v4 = vadd.f32 %v1840_v32, %v2872_v60  ;;  %v2167_v42 = vpop.f32.mrb[33].mxu0 }
0x1253   :  { %v1843_v9 = vpop.f32.mrb[34].mxu0 }
0x1254   :  { %v1848_v27 = vadd.f32 %v1843_v9, %v2875_v17  ;;  %v2168_v3 = vpop.f32.mrb[35].mxu0  ;;  %v1850_v33 = vmul.f32 %v1847_v4, %v1847_v4 }
0x1256   :  { %v1852_v21 = vsel %vm72_vm0, %v1850_v33, 0.0  ;;  %v1851_v52 = vmul.f32 %v1848_v27, %v1848_v27 }
0x1257   :  { %1853 = vadd.xlane.f32.xlu1 %v1852_v21 }
0x1258   :  { %v1855_v44 = vsel %vm72_vm0, %v1851_v52, 0.0 }
0x1259   :  { %1856 = vadd.xlane.f32.xlu0 %v1855_v44 }
0x12e4   :  { %v1854_v48 = vpop.xlane.xlu1 %1853 }
0x12e5   :  { %v1858_v18 = vmul.f32 0.03125, %v1854_v48 }
0x12e6   :  { %v1857_v39 = vpop.xlane.xlu0 %1856 }
0x12e7   :  { %v1860_v45 = vadd.f32 1e-05, %v1858_v18  ;;  %v1859_v38 = vmul.f32 0.03125, %v1857_v39 }
0x12e9   :  { %2323 = vrsqrt.f32 %v1860_v45  ;;  %v1861_v20 = vadd.f32 1e-05, %v1859_v38 }
0x12eb   :  { %2325 = vrsqrt.f32 %v1861_v20 }
0x12f3   :  { %v2324_v60 = vpop.eup %2323 }
0x12f4   :  { %v1864_v13 = vmul.f32 %v2324_v60, %v1847_v4 }
0x12f5   :  { %v2326_v17 = vpop.eup %2325 }
0x12f6   :  { %v1872_v47 = vmul.f32 %v1962_v41, %v1864_v13  ;;  %v1865_v53 = vmul.f32 %v2326_v17, %v1848_v27 }
0x12f8   :  { %1874 = vst.msk [vmem:[%s2940_s11] sm:$0xff] %vm72_vm0, %v1872_v47  ;;  %v1873_v7 = vmul.f32 %v1962_v41, %v1865_v53 }
0x12fa   :  { %1875 = vst.msk [vmem:[%s2940_s11 + $0x8] sm:$0xff] %vm72_vm0, %v1873_v7 }

</bundles_post_ra>
